<compile_context>
chip_gen: v7x
topology: tpu7x:2x2x1
jax: 0.10.0
libtpu: 0.0.40
codegen_flags: <defaults>
</compile_context>

<pallas_src>
import functools

import jax
import jax.numpy as jnp
from jax.experimental import pallas as pl
from jax.experimental.pallas import tpu as pltpu


def _resblock_kernel(x_ref, top_ref, bot_ref, w1_ref, b1_ref, w2_ref, b2_ref,
                     o_ref, xpad1_ref, xpad2_ref, *, W, C, SH, res_scale):
    f32 = jnp.float32
    bf16 = jnp.bfloat16

    s = pl.program_id(1)
    ns = pl.num_programs(1)

    M1 = (SH + 2) * W          # conv1 rows incl. one halo row on each side
    M2 = SH * W                # conv2 / output rows of this strip

    # ---- stage zero-padded input strip (with 2-row halo) into VMEM ----------
    # xpad1 row r  <->  image row row0 - 2 + r ;  col j <-> image col j - 1.
    zcol1 = jnp.zeros((SH + 4, 1, C), f32)
    xpad1_ref[:, 0:1, :] = zcol1                   # left zero column
    xpad1_ref[:, W + 1:W + 2, :] = zcol1           # right zero column

    top_ok = (s > 0).astype(f32)                   # top halo rows inside image?
    bot_ok = (s < ns - 1).astype(f32)              # bottom halo rows inside image?

    x_mid = x_ref[0]                               # (SH, W, C) f32; reused as identity
    xpad1_ref[0:2, 1:W + 1, :] = top_ref[0] * top_ok
    xpad1_ref[2:SH + 2, 1:W + 1, :] = x_mid
    xpad1_ref[SH + 2:SH + 4, 1:W + 1, :] = bot_ref[0] * bot_ok

    # ---- conv1: single im2col matmul over SH+2 output rows (incl. halo) -----
    slab1 = jnp.concatenate(
        [xpad1_ref[dy:dy + SH + 2, dx:dx + W, :].reshape(M1, C).astype(bf16)
         for dy in range(3) for dx in range(3)], axis=-1)        # (M1, 9C) bf16
    y1 = jnp.dot(slab1, w1_ref[...], preferred_element_type=f32)
    y1 = jnp.maximum(y1 + b1_ref[...], 0.0)                      # bias + ReLU (f32)

    # ---- stage relu(conv1) into the second zero-padded scratch --------------
    zcol2 = jnp.zeros((SH + 2, 1, C), f32)
    xpad2_ref[:, 0:1, :] = zcol2
    xpad2_ref[:, W + 1:W + 2, :] = zcol2
    xpad2_ref[:, 1:W + 1, :] = y1.reshape(SH + 2, W, C)

    # conv2's zero padding at the image top / bottom boundary
    @pl.when(s == 0)
    def _():
        xpad2_ref[0:1, :, :] = jnp.zeros((1, W + 2, C), f32)

    @pl.when(s == ns - 1)
    def _():
        xpad2_ref[SH + 1:SH + 2, :, :] = jnp.zeros((1, W + 2, C), f32)

    # ---- conv2: single im2col matmul -----------------------------------------
    slab2 = jnp.concatenate(
        [xpad2_ref[dy:dy + SH, dx:dx + W, :].reshape(M2, C).astype(bf16)
         for dy in range(3) for dx in range(3)], axis=-1)        # (M2, 9C) bf16
    y2 = jnp.dot(slab2, w2_ref[...], preferred_element_type=f32) + b2_ref[...]

    # ---- residual (identity from the already-loaded f32 strip) ---------------
    out = x_mid.reshape(M2, C) + y2 * res_scale
    o_ref[...] = out.reshape(1, SH, W, C).astype(o_ref.dtype)


def residual_block_no_bn_nhwc(x, w1, b1, w2, b2, *, res_scale=1.0, strip_h=8):
    """x: (B, H, W, C) float32 NHWC.  w*: (Cout, Cin, 3, 3) OIHW, b*: (C,)."""
    B, H, W, C = x.shape
    SH = strip_h
    if H < SH or H % SH != 0 or SH % 2 != 0:
        SH = H
    assert SH >= 2 and SH % 2 == 0 and H % SH == 0, \
        "H must be even and divisible by an even strip height"
    n_strips = H // SH
    half = SH // 2           # strip height measured in 2-row halo blocks

    # OIHW -> (kh, kw, Cin, Cout) -> (9*Cin, Cout); bf16 operands for the MXU.
    w1k = jnp.transpose(w1, (2, 3, 1, 0)).reshape(9 * C, C).astype(jnp.bfloat16)
    w2k = jnp.transpose(w2, (2, 3, 1, 0)).reshape(9 * C, C).astype(jnp.bfloat16)
    b1r = b1.reshape(1, C).astype(jnp.float32)
    b2r = b2.reshape(1, C).astype(jnp.float32)

    kernel = functools.partial(_resblock_kernel, W=W, C=C, SH=SH,
                               res_scale=float(res_scale))

    # Strip body + 2-row halo blocks.  Halo index maps clamp at the image
    # border; the clamped (out-of-image) halo rows are zeroed in the kernel.
    def strip_map(b, s):
        return (b, s, 0, 0)

    def top_halo_map(b, s):
        return (b, jnp.maximum(half * s - 1, 0), 0, 0)

    def bot_halo_map(b, s):
        return (b, jnp.minimum(half * (s + 1), H // 2 - 1), 0, 0)

    return pl.pallas_call(
        kernel,
        out_shape=jax.ShapeDtypeStruct((B, H, W, C), x.dtype),
        grid_spec=pltpu.PrefetchScalarGridSpec(
            num_scalar_prefetch=0,
            grid=(B, n_strips),
            in_specs=[
                pl.BlockSpec((1, SH, W, C), strip_map),          # strip body
                pl.BlockSpec((1, 2, W, C), top_halo_map),        # 2-row top halo
                pl.BlockSpec((1, 2, W, C), bot_halo_map),        # 2-row bottom halo
                pl.BlockSpec((9 * C, C), lambda b, s: (0, 0)),   # conv1 weight
                pl.BlockSpec((1, C), lambda b, s: (0, 0)),       # conv1 bias
                pl.BlockSpec((9 * C, C), lambda b, s: (0, 0)),   # conv2 weight
                pl.BlockSpec((1, C), lambda b, s: (0, 0)),       # conv2 bias
            ],
            out_specs=pl.BlockSpec((1, SH, W, C), lambda b, s: (b, s, 0, 0)),
            scratch_shapes=[
                pltpu.VMEM((SH + 4, W + 2, C), jnp.float32),     # padded x strip
                pltpu.VMEM((SH + 2, W + 2, C), jnp.float32),     # padded relu(conv1)
            ],
        ),
        compiler_params=pltpu.CompilerParams(
            dimension_semantics=("parallel", "parallel")),
    )(x, x, x, w1k, b1r, w2k, b2r)


def residual_block_no_bn(x_nchw, w1, b1, w2, b2, res_scale=1.0):
    """PyTorch-layout wrapper: x (B, C, H, W), returns (B, C, H, W).

    The NCHW<->NHWC transposes are kept at this boundary only; when chaining
    many ResidualBlockNoBN (as in ConvResidualBlocks / the BasicVSR trunks),
    call residual_block_no_bn_nhwc directly and hoist the transposes to the
    model boundary.
    """
    x = jnp.transpose(x_nchw, (0, 2, 3, 1))
    y = residual_block_no_bn_nhwc(x, w1, b1, w2, b2, res_scale=res_scale)
    return jnp.transpose(y, (0, 3, 1, 2))


def _reference(x, w1, b1, w2, b2, res_scale):
    dn = jax.lax.conv_dimension_numbers(x.shape, w1.shape, ('NCHW', 'OIHW', 'NCHW'))
    y = jax.lax.conv_general_dilated(x, w1, (1, 1), ((1, 1), (1, 1)),
                                     dimension_numbers=dn) + b1[None, :, None, None]
    y = jnp.maximum(y, 0.0)
    y = jax.lax.conv_general_dilated(y, w2, (1, 1), ((1, 1), (1, 1)),
                                     dimension_numbers=dn) + b2[None, :, None, None]
    return x + y * res_scale


if __name__ == "__main__":
    B, C, H, W = 2, 64, 16, 16          # num_feat default of the module is 64
    res_scale = 1.0

    key = jax.random.PRNGKey(0)
    kx, kw1, kb1, kw2, kb2 = jax.random.split(key, 5)

    x = jax.random.normal(kx, (B, C, H, W), dtype=jnp.float32)
    # deterministic synthetic init (mimics default_init_weights' 0.1 scale)
    w1 = 0.1 * jax.random.normal(kw1, (C, C, 3, 3), dtype=jnp.float32) * 0.2
    b1 = 0.1 * jax.random.normal(kb1, (C,), dtype=jnp.float32)
    w2 = 0.1 * jax.random.normal(kw2, (C, C, 3, 3), dtype=jnp.float32) * 0.2
    b2 = 0.1 * jax.random.normal(kb2, (C,), dtype=jnp.float32)

    out = residual_block_no_bn(x, w1, b1, w2, b2, res_scale=res_scale)
    out = jax.block_until_ready(out)

    ref = _reference(x, w1, b1, w2, b2, res_scale)
    assert out.shape == ref.shape and out.dtype == ref.dtype
    # bf16 MXU operands + f32 accumulation -> small, bounded deviation vs f32 conv
    assert jnp.allclose(out, ref, atol=2e-2, rtol=2e-2), "mismatch vs reference conv"

    print("KERNEL_OK")
</pallas_src>

<mosaic_0001>
module attributes {stable_mosaic.version = 11 : i64} {
  func.func @_resblock_kernel(%arg0: i32, %arg1: i32, %arg2: memref<1x8x16x64xf32, #tpu.memory_space<vmem>>, %arg3: memref<1x2x16x64xf32, #tpu.memory_space<vmem>>, %arg4: memref<1x2x16x64xf32, #tpu.memory_space<vmem>>, %arg5: memref<576x64xbf16, #tpu.memory_space<vmem>>, %arg6: memref<1x64xf32, #tpu.memory_space<vmem>>, %arg7: memref<576x64xbf16, #tpu.memory_space<vmem>>, %arg8: memref<1x64xf32, #tpu.memory_space<vmem>>, %arg9: memref<1x8x16x64xf32, #tpu.memory_space<vmem>>, %arg10: memref<12x18x64xf32, #tpu.memory_space<vmem>>, %arg11: memref<10x18x64xf32, #tpu.memory_space<vmem>>) attributes {dimension_semantics = [#tpu.dimension_semantics<parallel>, #tpu.dimension_semantics<parallel>], iteration_bounds = array<i64: 2, 2>, scalar_prefetch = 0 : i64, scratch_operands = 2 : i64, tpu.core_type = #tpu.core_type<tc>, window_params = [{transform_indices = @transform_0, window_bounds = array<i64: 1, 8, 16, 64>}, {transform_indices = @transform_1, window_bounds = array<i64: 1, 2, 16, 64>}, {transform_indices = @transform_2, window_bounds = array<i64: 1, 2, 16, 64>}, {pipeline_mode = #tpu.pipeline_mode<synchronous>, transform_indices = @transform_3, window_bounds = array<i64: 576, 64>}, {pipeline_mode = #tpu.pipeline_mode<synchronous>, transform_indices = @transform_4, window_bounds = array<i64: 1, 64>}, {pipeline_mode = #tpu.pipeline_mode<synchronous>, transform_indices = @transform_5, window_bounds = array<i64: 576, 64>}, {pipeline_mode = #tpu.pipeline_mode<synchronous>, transform_indices = @transform_6, window_bounds = array<i64: 1, 64>}, {transform_indices = @transform_7, window_bounds = array<i64: 1, 8, 16, 64>}]} {
    %cst = arith.constant 0.000000e+00 : f32
    %0 = vector.broadcast %cst : f32 to vector<12x1x64xf32>
    %c0 = arith.constant 0 : index
    %c0_0 = arith.constant 0 : index
    %c0_1 = arith.constant 0 : index
    %1 = vector.load %arg10[%c0, %c0_0, %c0_1] : memref<12x18x64xf32, #tpu.memory_space<vmem>>, vector<12x1x64xf32>
    tpu.vector_store %arg10[%c0, %c0_0, %c0_1], %0 {strides = array<i32>} : memref<12x18x64xf32, #tpu.memory_space<vmem>>, vector<12x1x64xf32>,
    %c0_2 = arith.constant 0 : index
    %c17 = arith.constant 17 : index
    %c0_3 = arith.constant 0 : index
    %2 = vector.load %arg10[%c0_2, %c17, %c0_3] : memref<12x18x64xf32, #tpu.memory_space<vmem>>, vector<12x1x64xf32>
    tpu.vector_store %arg10[%c0_2, %c17, %c0_3], %0 {strides = array<i32>} : memref<12x18x64xf32, #tpu.memory_space<vmem>>, vector<12x1x64xf32>,
    %c0_i32 = arith.constant 0 : i32
    %3 = arith.cmpi sgt, %arg1, %c0_i32 : i32
    %4 = arith.extui %3 : i1 to i32
    %5 = arith.sitofp %4 : i32 to f32
    %c1_i32 = arith.constant 1 : i32
    %6 = arith.cmpi slt, %arg1, %c1_i32 : i32
    %7 = arith.extui %6 : i1 to i32
    %8 = arith.sitofp %7 : i32 to f32
    %c0_4 = arith.constant 0 : index
    %c0_5 = arith.constant 0 : index
    %c0_6 = arith.constant 0 : index
    %c0_7 = arith.constant 0 : index
    %9 = vector.load %arg2[%c0_4, %c0_5, %c0_6, %c0_7] : memref<1x8x16x64xf32, #tpu.memory_space<vmem>>, vector<1x8x16x64xf32>
    %10 = vector.shape_cast %9 : vector<1x8x16x64xf32> to vector<8x16x64xf32>
    %c0_8 = arith.constant 0 : index
    %c0_9 = arith.constant 0 : index
    %c0_10 = arith.constant 0 : index
    %c0_11 = arith.constant 0 : index
    %11 = vector.load %arg3[%c0_8, %c0_9, %c0_10, %c0_11] : memref<1x2x16x64xf32, #tpu.memory_space<vmem>>, vector<1x2x16x64xf32>
    %12 = vector.shape_cast %11 : vector<1x2x16x64xf32> to vector<2x16x64xf32>
    %13 = vector.broadcast %5 : f32 to vector<2x16x64xf32>
    %14 = arith.mulf %12, %13 : vector<2x16x64xf32>
    %c0_12 = arith.constant 0 : index
    %c1 = arith.constant 1 : index
    %c0_13 = arith.constant 0 : index
    %15 = vector.load %arg10[%c0_12, %c1, %c0_13] : memref<12x18x64xf32, #tpu.memory_space<vmem>>, vector<2x16x64xf32>
    tpu.vector_store %arg10[%c0_12, %c1, %c0_13], %14 {strides = array<i32>} : memref<12x18x64xf32, #tpu.memory_space<vmem>>, vector<2x16x64xf32>,
    %c2 = arith.constant 2 : index
    %c1_14 = arith.constant 1 : index
    %c0_15 = arith.constant 0 : index
    %16 = vector.load %arg10[%c2, %c1_14, %c0_15] : memref<12x18x64xf32, #tpu.memory_space<vmem>>, vector<8x16x64xf32>
    tpu.vector_store %arg10[%c2, %c1_14, %c0_15], %10 {strides = array<i32>} : memref<12x18x64xf32, #tpu.memory_space<vmem>>, vector<8x16x64xf32>,
    %c0_16 = arith.constant 0 : index
    %c0_17 = arith.constant 0 : index
    %c0_18 = arith.constant 0 : index
    %c0_19 = arith.constant 0 : index
    %17 = vector.load %arg4[%c0_16, %c0_17, %c0_18, %c0_19] : memref<1x2x16x64xf32, #tpu.memory_space<vmem>>, vector<1x2x16x64xf32>
    %18 = vector.shape_cast %17 : vector<1x2x16x64xf32> to vector<2x16x64xf32>
    %19 = vector.broadcast %8 : f32 to vector<2x16x64xf32>
    %20 = arith.mulf %18, %19 : vector<2x16x64xf32>
    %c10 = arith.constant 10 : index
    %c1_20 = arith.constant 1 : index
    %c0_21 = arith.constant 0 : index
    %21 = vector.load %arg10[%c10, %c1_20, %c0_21] : memref<12x18x64xf32, #tpu.memory_space<vmem>>, vector<2x16x64xf32>
    tpu.vector_store %arg10[%c10, %c1_20, %c0_21], %20 {strides = array<i32>} : memref<12x18x64xf32, #tpu.memory_space<vmem>>, vector<2x16x64xf32>,
    %c0_22 = arith.constant 0 : index
    %c0_23 = arith.constant 0 : index
    %c0_24 = arith.constant 0 : index
    %22 = vector.load %arg10[%c0_22, %c0_23, %c0_24] : memref<12x18x64xf32, #tpu.memory_space<vmem>>, vector<10x16x64xf32>
    %23 = vector.shape_cast %22 : vector<10x16x64xf32> to vector<160x64xf32>
    %24 = arith.truncf %23 : vector<160x64xf32> to vector<160x64xbf16>
    %c0_25 = arith.constant 0 : index
    %c1_26 = arith.constant 1 : index
    %c0_27 = arith.constant 0 : index
    %25 = vector.load %arg10[%c0_25, %c1_26, %c0_27] : memref<12x18x64xf32, #tpu.memory_space<vmem>>, vector<10x16x64xf32>
    %26 = vector.shape_cast %25 : vector<10x16x64xf32> to vector<160x64xf32>
    %27 = arith.truncf %26 : vector<160x64xf32> to vector<160x64xbf16>
    %c0_28 = arith.constant 0 : index
    %c2_29 = arith.constant 2 : index
    %c0_30 = arith.constant 0 : index
    %28 = vector.load %arg10[%c0_28, %c2_29, %c0_30] : memref<12x18x64xf32, #tpu.memory_space<vmem>>, vector<10x16x64xf32>
    %29 = vector.shape_cast %28 : vector<10x16x64xf32> to vector<160x64xf32>
    %30 = arith.truncf %29 : vector<160x64xf32> to vector<160x64xbf16>
    %c1_31 = arith.constant 1 : index
    %c0_32 = arith.constant 0 : index
    %c0_33 = arith.constant 0 : index
    %31 = vector.load %arg10[%c1_31, %c0_32, %c0_33] : memref<12x18x64xf32, #tpu.memory_space<vmem>>, vector<10x16x64xf32>
    %32 = vector.shape_cast %31 : vector<10x16x64xf32> to vector<160x64xf32>
    %33 = arith.truncf %32 : vector<160x64xf32> to vector<160x64xbf16>
    %c1_34 = arith.constant 1 : index
    %c1_35 = arith.constant 1 : index
    %c0_36 = arith.constant 0 : index
    %34 = vector.load %arg10[%c1_34, %c1_35, %c0_36] : memref<12x18x64xf32, #tpu.memory_space<vmem>>, vector<10x16x64xf32>
    %35 = vector.shape_cast %34 : vector<10x16x64xf32> to vector<160x64xf32>
    %36 = arith.truncf %35 : vector<160x64xf32> to vector<160x64xbf16>
    %c1_37 = arith.constant 1 : index
    %c2_38 = arith.constant 2 : index
    %c0_39 = arith.constant 0 : index
    %37 = vector.load %arg10[%c1_37, %c2_38, %c0_39] : memref<12x18x64xf32, #tpu.memory_space<vmem>>, vector<10x16x64xf32>
    %38 = vector.shape_cast %37 : vector<10x16x64xf32> to vector<160x64xf32>
    %39 = arith.truncf %38 : vector<160x64xf32> to vector<160x64xbf16>
    %c2_40 = arith.constant 2 : index
    %c0_41 = arith.constant 0 : index
    %c0_42 = arith.constant 0 : index
    %40 = vector.load %arg10[%c2_40, %c0_41, %c0_42] : memref<12x18x64xf32, #tpu.memory_space<vmem>>, vector<10x16x64xf32>
    %41 = vector.shape_cast %40 : vector<10x16x64xf32> to vector<160x64xf32>
    %42 = arith.truncf %41 : vector<160x64xf32> to vector<160x64xbf16>
    %c2_43 = arith.constant 2 : index
    %c1_44 = arith.constant 1 : index
    %c0_45 = arith.constant 0 : index
    %43 = vector.load %arg10[%c2_43, %c1_44, %c0_45] : memref<12x18x64xf32, #tpu.memory_space<vmem>>, vector<10x16x64xf32>
    %44 = vector.shape_cast %43 : vector<10x16x64xf32> to vector<160x64xf32>
    %45 = arith.truncf %44 : vector<160x64xf32> to vector<160x64xbf16>
    %c2_46 = arith.constant 2 : index
    %c2_47 = arith.constant 2 : index
    %c0_48 = arith.constant 0 : index
    %46 = vector.load %arg10[%c2_46, %c2_47, %c0_48] : memref<12x18x64xf32, #tpu.memory_space<vmem>>, vector<10x16x64xf32>
    %47 = vector.shape_cast %46 : vector<10x16x64xf32> to vector<160x64xf32>
    %48 = arith.truncf %47 : vector<160x64xf32> to vector<160x64xbf16>
    %49 = tpu.concatenate %24, %27, %30, %33, %36, %39, %42, %45, %48 in 1 : vector<160x64xbf16>, vector<160x64xbf16>, vector<160x64xbf16>, vector<160x64xbf16>, vector<160x64xbf16>, vector<160x64xbf16>, vector<160x64xbf16>, vector<160x64xbf16>, vector<160x64xbf16> -> vector<160x576xbf16>
    %c0_49 = arith.constant 0 : index
    %c0_50 = arith.constant 0 : index
    %50 = vector.load %arg5[%c0_49, %c0_50] : memref<576x64xbf16, #tpu.memory_space<vmem>>, vector<576x64xbf16>
    %cst_51 = arith.constant dense<0.000000e+00> : vector<160x64xf32>
    %51 = tpu.matmul %49, %50, %cst_51 {dimension_numbers = #tpu.dot_dimension_numbers<[1], [0], [0], [1], [0, 0, 1, 1], [], []>} : vector<160x576xbf16>, vector<576x64xbf16>, vector<160x64xf32> -> vector<160x64xf32>
    %c0_52 = arith.constant 0 : index
    %c0_53 = arith.constant 0 : index
    %52 = vector.load %arg6[%c0_52, %c0_53] : memref<1x64xf32, #tpu.memory_space<vmem>>, vector<1x64xf32>
    %53 = vector.broadcast %52 : vector<1x64xf32> to vector<160x64xf32>
    %54 = arith.addf %51, %53 : vector<160x64xf32>
    %cst_54 = arith.constant 0.000000e+00 : f32
    %55 = vector.broadcast %cst_54 : f32 to vector<160x64xf32>
    %56 = arith.maximumf %54, %55 : vector<160x64xf32>
    %cst_55 = arith.constant 0.000000e+00 : f32
    %57 = vector.broadcast %cst_55 : f32 to vector<10x1x64xf32>
    %c0_56 = arith.constant 0 : index
    %c0_57 = arith.constant 0 : index
    %c0_58 = arith.constant 0 : index
    %58 = vector.load %arg11[%c0_56, %c0_57, %c0_58] : memref<10x18x64xf32, #tpu.memory_space<vmem>>, vector<10x1x64xf32>
    tpu.vector_store %arg11[%c0_56, %c0_57, %c0_58], %57 {strides = array<i32>} : memref<10x18x64xf32, #tpu.memory_space<vmem>>, vector<10x1x64xf32>,
    %c0_59 = arith.constant 0 : index
    %c17_60 = arith.constant 17 : index
    %c0_61 = arith.constant 0 : index
    %59 = vector.load %arg11[%c0_59, %c17_60, %c0_61] : memref<10x18x64xf32, #tpu.memory_space<vmem>>, vector<10x1x64xf32>
    tpu.vector_store %arg11[%c0_59, %c17_60, %c0_61], %57 {strides = array<i32>} : memref<10x18x64xf32, #tpu.memory_space<vmem>>, vector<10x1x64xf32>,
    %60 = vector.shape_cast %56 : vector<160x64xf32> to vector<10x16x64xf32>
    %c0_62 = arith.constant 0 : index
    %c1_63 = arith.constant 1 : index
    %c0_64 = arith.constant 0 : index
    %61 = vector.load %arg11[%c0_62, %c1_63, %c0_64] : memref<10x18x64xf32, #tpu.memory_space<vmem>>, vector<10x16x64xf32>
    tpu.vector_store %arg11[%c0_62, %c1_63, %c0_64], %60 {strides = array<i32>} : memref<10x18x64xf32, #tpu.memory_space<vmem>>, vector<10x16x64xf32>,
    %c0_i32_65 = arith.constant 0 : i32
    %62 = arith.cmpi eq, %arg1, %c0_i32_65 : i32
    %63 = arith.extui %62 : i1 to i32
    %c0_i32_66 = arith.constant 0 : i32
    %64 = arith.cmpi ne, %63, %c0_i32_66 : i32
    scf.if %64 {
      %cst_106 = arith.constant 0.000000e+00 : f32
      %107 = vector.broadcast %cst_106 : f32 to vector<1x18x64xf32>
      %c0_107 = arith.constant 0 : index
      %c0_108 = arith.constant 0 : index
      %c0_109 = arith.constant 0 : index
      %108 = vector.load %arg11[%c0_107, %c0_108, %c0_109] : memref<10x18x64xf32, #tpu.memory_space<vmem>>, vector<1x18x64xf32>
      tpu.vector_store %arg11[%c0_107, %c0_108, %c0_109], %107 {strides = array<i32>} : memref<10x18x64xf32, #tpu.memory_space<vmem>>, vector<1x18x64xf32>,
    } else {
    }
    %c1_i32_67 = arith.constant 1 : i32
    %65 = arith.cmpi eq, %arg1, %c1_i32_67 : i32
    %66 = arith.extui %65 : i1 to i32
    %c0_i32_68 = arith.constant 0 : i32
    %67 = arith.cmpi ne, %66, %c0_i32_68 : i32
    scf.if %67 {
      %cst_106 = arith.constant 0.000000e+00 : f32
      %107 = vector.broadcast %cst_106 : f32 to vector<1x18x64xf32>
      %c9 = arith.constant 9 : index
      %c0_107 = arith.constant 0 : index
      %c0_108 = arith.constant 0 : index
      %108 = vector.load %arg11[%c9, %c0_107, %c0_108] : memref<10x18x64xf32, #tpu.memory_space<vmem>>, vector<1x18x64xf32>
      tpu.vector_store %arg11[%c9, %c0_107, %c0_108], %107 {strides = array<i32>} : memref<10x18x64xf32, #tpu.memory_space<vmem>>, vector<1x18x64xf32>,
    } else {
    }
    %c0_69 = arith.constant 0 : index
    %c0_70 = arith.constant 0 : index
    %c0_71 = arith.constant 0 : index
    %68 = vector.load %arg11[%c0_69, %c0_70, %c0_71] : memref<10x18x64xf32, #tpu.memory_space<vmem>>, vector<8x16x64xf32>
    %69 = vector.shape_cast %68 : vector<8x16x64xf32> to vector<128x64xf32>
    %70 = arith.truncf %69 : vector<128x64xf32> to vector<128x64xbf16>
    %c0_72 = arith.constant 0 : index
    %c1_73 = arith.constant 1 : index
    %c0_74 = arith.constant 0 : index
    %71 = vector.load %arg11[%c0_72, %c1_73, %c0_74] : memref<10x18x64xf32, #tpu.memory_space<vmem>>, vector<8x16x64xf32>
    %72 = vector.shape_cast %71 : vector<8x16x64xf32> to vector<128x64xf32>
    %73 = arith.truncf %72 : vector<128x64xf32> to vector<128x64xbf16>
    %c0_75 = arith.constant 0 : index
    %c2_76 = arith.constant 2 : index
    %c0_77 = arith.constant 0 : index
    %74 = vector.load %arg11[%c0_75, %c2_76, %c0_77] : memref<10x18x64xf32, #tpu.memory_space<vmem>>, vector<8x16x64xf32>
    %75 = vector.shape_cast %74 : vector<8x16x64xf32> to vector<128x64xf32>
    %76 = arith.truncf %75 : vector<128x64xf32> to vector<128x64xbf16>
    %c1_78 = arith.constant 1 : index
    %c0_79 = arith.constant 0 : index
    %c0_80 = arith.constant 0 : index
    %77 = vector.load %arg11[%c1_78, %c0_79, %c0_80] : memref<10x18x64xf32, #tpu.memory_space<vmem>>, vector<8x16x64xf32>
    %78 = vector.shape_cast %77 : vector<8x16x64xf32> to vector<128x64xf32>
    %79 = arith.truncf %78 : vector<128x64xf32> to vector<128x64xbf16>
    %c1_81 = arith.constant 1 : index
    %c1_82 = arith.constant 1 : index
    %c0_83 = arith.constant 0 : index
    %80 = vector.load %arg11[%c1_81, %c1_82, %c0_83] : memref<10x18x64xf32, #tpu.memory_space<vmem>>, vector<8x16x64xf32>
    %81 = vector.shape_cast %80 : vector<8x16x64xf32> to vector<128x64xf32>
    %82 = arith.truncf %81 : vector<128x64xf32> to vector<128x64xbf16>
    %c1_84 = arith.constant 1 : index
    %c2_85 = arith.constant 2 : index
    %c0_86 = arith.constant 0 : index
    %83 = vector.load %arg11[%c1_84, %c2_85, %c0_86] : memref<10x18x64xf32, #tpu.memory_space<vmem>>, vector<8x16x64xf32>
    %84 = vector.shape_cast %83 : vector<8x16x64xf32> to vector<128x64xf32>
    %85 = arith.truncf %84 : vector<128x64xf32> to vector<128x64xbf16>
    %c2_87 = arith.constant 2 : index
    %c0_88 = arith.constant 0 : index
    %c0_89 = arith.constant 0 : index
    %86 = vector.load %arg11[%c2_87, %c0_88, %c0_89] : memref<10x18x64xf32, #tpu.memory_space<vmem>>, vector<8x16x64xf32>
    %87 = vector.shape_cast %86 : vector<8x16x64xf32> to vector<128x64xf32>
    %88 = arith.truncf %87 : vector<128x64xf32> to vector<128x64xbf16>
    %c2_90 = arith.constant 2 : index
    %c1_91 = arith.constant 1 : index
    %c0_92 = arith.constant 0 : index
    %89 = vector.load %arg11[%c2_90, %c1_91, %c0_92] : memref<10x18x64xf32, #tpu.memory_space<vmem>>, vector<8x16x64xf32>
    %90 = vector.shape_cast %89 : vector<8x16x64xf32> to vector<128x64xf32>
    %91 = arith.truncf %90 : vector<128x64xf32> to vector<128x64xbf16>
    %c2_93 = arith.constant 2 : index
    %c2_94 = arith.constant 2 : index
    %c0_95 = arith.constant 0 : index
    %92 = vector.load %arg11[%c2_93, %c2_94, %c0_95] : memref<10x18x64xf32, #tpu.memory_space<vmem>>, vector<8x16x64xf32>
    %93 = vector.shape_cast %92 : vector<8x16x64xf32> to vector<128x64xf32>
    %94 = arith.truncf %93 : vector<128x64xf32> to vector<128x64xbf16>
    %95 = tpu.concatenate %70, %73, %76, %79, %82, %85, %88, %91, %94 in 1 : vector<128x64xbf16>, vector<128x64xbf16>, vector<128x64xbf16>, vector<128x64xbf16>, vector<128x64xbf16>, vector<128x64xbf16>, vector<128x64xbf16>, vector<128x64xbf16>, vector<128x64xbf16> -> vector<128x576xbf16>
    %c0_96 = arith.constant 0 : index
    %c0_97 = arith.constant 0 : index
    %96 = vector.load %arg7[%c0_96, %c0_97] : memref<576x64xbf16, #tpu.memory_space<vmem>>, vector<576x64xbf16>
    %cst_98 = arith.constant dense<0.000000e+00> : vector<128x64xf32>
    %97 = tpu.matmul %95, %96, %cst_98 {dimension_numbers = #tpu.dot_dimension_numbers<[1], [0], [0], [1], [0, 0, 1, 1], [], []>} : vector<128x576xbf16>, vector<576x64xbf16>, vector<128x64xf32> -> vector<128x64xf32>
    %c0_99 = arith.constant 0 : index
    %c0_100 = arith.constant 0 : index
    %98 = vector.load %arg8[%c0_99, %c0_100] : memref<1x64xf32, #tpu.memory_space<vmem>>, vector<1x64xf32>
    %99 = vector.broadcast %98 : vector<1x64xf32> to vector<128x64xf32>
    %100 = arith.addf %97, %99 : vector<128x64xf32>
    %101 = vector.shape_cast %10 : vector<8x16x64xf32> to vector<128x64xf32>
    %cst_101 = arith.constant 1.000000e+00 : f32
    %102 = vector.broadcast %cst_101 : f32 to vector<128x64xf32>
    %103 = arith.mulf %100, %102 : vector<128x64xf32>
    %104 = arith.addf %101, %103 : vector<128x64xf32>
    %105 = vector.shape_cast %104 : vector<128x64xf32> to vector<1x8x16x64xf32>
    %c0_102 = arith.constant 0 : index
    %c0_103 = arith.constant 0 : index
    %c0_104 = arith.constant 0 : index
    %c0_105 = arith.constant 0 : index
    %106 = vector.load %arg9[%c0_102, %c0_103, %c0_104, %c0_105] : memref<1x8x16x64xf32, #tpu.memory_space<vmem>>, vector<1x8x16x64xf32>
    tpu.vector_store %arg9[%c0_102, %c0_103, %c0_104, %c0_105], %105 {strides = array<i32>} : memref<1x8x16x64xf32, #tpu.memory_space<vmem>>, vector<1x8x16x64xf32>,
    return
  }
  func.func @transform_0(%arg0: i32, %arg1: i32) -> (i32, i32, i32, i32) {
    %c0_i32 = arith.constant 0 : i32
    %c0_i32_0 = arith.constant 0 : i32
    %c0_i32_1 = arith.constant 0 : i32
    return %arg0, %arg1, %c0_i32, %c0_i32_0 : i32, i32, i32, i32
  }
  func.func @transform_1(%arg0: i32, %arg1: i32) -> (i32, i32, i32, i32) {
    %c4_i32 = arith.constant 4 : i32
    %0 = arith.muli %c4_i32, %arg1 : i32
    %c1_i32 = arith.constant 1 : i32
    %1 = arith.subi %0, %c1_i32 : i32
    %c0_i32 = arith.constant 0 : i32
    %2 = arith.maxsi %1, %c0_i32 : i32
    %c0_i32_0 = arith.constant 0 : i32
    %c0_i32_1 = arith.constant 0 : i32
    %c0_i32_2 = arith.constant 0 : i32
    return %arg0, %2, %c0_i32_0, %c0_i32_1 : i32, i32, i32, i32
  }
  func.func @transform_2(%arg0: i32, %arg1: i32) -> (i32, i32, i32, i32) {
    %c1_i32 = arith.constant 1 : i32
    %0 = arith.addi %arg1, %c1_i32 : i32
    %c4_i32 = arith.constant 4 : i32
    %1 = arith.muli %c4_i32, %0 : i32
    %c7_i32 = arith.constant 7 : i32
    %2 = arith.minsi %1, %c7_i32 : i32
    %c0_i32 = arith.constant 0 : i32
    %c0_i32_0 = arith.constant 0 : i32
    %c0_i32_1 = arith.constant 0 : i32
    return %arg0, %2, %c0_i32, %c0_i32_0 : i32, i32, i32, i32
  }
  func.func @transform_3(%arg0: i32, %arg1: i32) -> (i32, i32) {
    %c0_i32 = arith.constant 0 : i32
    %c0_i32_0 = arith.constant 0 : i32
    %c0_i32_1 = arith.constant 0 : i32
    return %c0_i32, %c0_i32_0 : i32, i32
  }
  func.func @transform_4(%arg0: i32, %arg1: i32) -> (i32, i32) {
    %c0_i32 = arith.constant 0 : i32
    %c0_i32_0 = arith.constant 0 : i32
    %c0_i32_1 = arith.constant 0 : i32
    return %c0_i32, %c0_i32_0 : i32, i32
  }
  func.func @transform_5(%arg0: i32, %arg1: i32) -> (i32, i32) {
    %c0_i32 = arith.constant 0 : i32
    %c0_i32_0 = arith.constant 0 : i32
    %c0_i32_1 = arith.constant 0 : i32
    return %c0_i32, %c0_i32_0 : i32, i32
  }
  func.func @transform_6(%arg0: i32, %arg1: i32) -> (i32, i32) {
    %c0_i32 = arith.constant 0 : i32
    %c0_i32_0 = arith.constant 0 : i32
    %c0_i32_1 = arith.constant 0 : i32
    return %c0_i32, %c0_i32_0 : i32, i32
  }
  func.func @transform_7(%arg0: i32, %arg1: i32) -> (i32, i32, i32, i32) {
    %c0_i32 = arith.constant 0 : i32
    %c0_i32_0 = arith.constant 0 : i32
    %c0_i32_1 = arith.constant 0 : i32
    return %arg0, %arg1, %c0_i32, %c0_i32_0 : i32, i32, i32, i32
  }
}

</mosaic_0001>

<bundles_post_ra>
// kernel: tpu_custom_call.1
= control target key start
LH: loop header
LB: loop body
LE: loop exit
PB: predicated region body
PF: predicated region fallthrough
CT: control target
= control target key end

     0   :  { %s5420_s0 = inlined_call_operand.vmem [shape: f32[2,16,16,64], index: 0, kind: input, shape index: {}]   ;;  %s5421_s1 = inlined_call_operand.hbm [shape: f32[2,16,16,64], index: 1, kind: input, shape index: {}]   ;;  %s5422_s2 = inlined_call_operand.hbm [shape: f32[2,16,16,64], index: 2, kind: input, shape index: {}]   ;;  %s5423_s3 = inlined_call_operand.vmem [shape: bf16[576,64], index: 3, kind: input, shape index: {}]   ;;  %s5424_s4 = inlined_call_operand.vmem [shape: f32[1,64], index: 4, kind: input, shape index: {}]   ;;  %s5425_s5 = inlined_call_operand.vmem [shape: bf16[576,64], index: 5, kind: input, shape index: {}]   ;;  %s5426_s6 = inlined_call_operand.vmem [shape: f32[1,64], index: 6, kind: input, shape index: {}]   ;;  %s5427_s7 = inlined_call_operand.hbm [shape: f32[2,16,16,64], index: 7, kind: output, shape index: {}]  }
   0x1   :  { %5445 = sst [smem:[#allocation20_spill]] %s5420_s0 }
   0x2   :  { %5446 = sst [smem:[#allocation21_spill]] %s5421_s1 }
   0x3   :  { %5447 = sst [smem:[#allocation22_spill]] %s5423_s3 }
   0x4   :  { %5448 = sst [smem:[#allocation23_spill]] %s5424_s4 }
   0x5   :  { %5449 = sst [smem:[#allocation24_spill]] %s5425_s5 }
   0x6   :  { %5450 = sst [smem:[#allocation25_spill]] %s5426_s6 }
   0x7   :  { %5451 = sst [smem:[#allocation26_spill]] %s5427_s7 }
   0x8   :  { %12 = vsyncpa [#allocation5], 0 }
   0x9   :  { %14 = vsyncpa [#allocation5 + $0x1], 0 }
   0xa   :  { %15 = vsyncpa [#allocation8], 0 }
   0xb   :  { %17 = vsyncpa [#allocation8 + $0x1], 0 }
   0xc   :  { %18 = vsyncpa [#allocation6], 0 }
   0xd   :  { %20 = vsyncpa [#allocation6 + $0x1], 0  ;;  %s4031_s24 = smov 0   ;;  %s4033_s25 = smov 0  }
   0xe   :  { %s4035_s26 = smov 0   ;;  %s4037_s27 = smov 0  }
   0xf   :  { %s4039_s28 = smov 0   ;;  %s4041_s29 = smov 0  }
  0x10   :  { %s4043_s30 = smov 0   ;;  %s4045_s8 = smov 0  }
  0x11   :  { %s4047_s9 = smov 0   ;;  %s4049_s10 = smov 0  }
  0x12   :  { %s4051_s11 = smov 0   ;;  %s4053_s12 = smov 0  }
  0x13   :  { %s4055_s13 = smov 0   ;;  %s4057_s14 = smov 0  }
  0x14 LB: > { %5452 = sst [smem:[#allocation13_spill]] %s3926_s24  ;;  %s3058_s15 = sadd.s32 4294967295, %s3978_s14   ;;  %s3978_s14 = sphi %s4057_s14, %s26_s14   ;;  %s3974_s13 = sphi %s4055_s13, %s5507_s13   ;;  %s3970_s12 = sphi %s4053_s12, %s5506_s12   ;;  %s3966_s11 = sphi %s4051_s11, %s5505_s11   ;;  %s3962_s10 = sphi %s4049_s10, %s5504_s10   ;;  %s3958_s9 = sphi %s4047_s9, %s5503_s9   ;;  %s3954_s8 = sphi %s4045_s8, %s5502_s8   ;;  %s3950_s30 = sphi %s4043_s30, %s5501_s30   ;;  %s3946_s29 = sphi %s4041_s29, %s5500_s29   ;;  %s3942_s28 = sphi %s4039_s28, %s5499_s28   ;;  %s3938_s27 = sphi %s4037_s27, %s5498_s27   ;;  %s3934_s26 = sphi %s4035_s26, %s5492_s26   ;;  %s3930_s25 = sphi %s4033_s25, %s5497_s25   ;;  %s3926_s24 = sphi %s4031_s24, %s5496_s24  }
  0x15   : > { %5453 = sst [smem:[#allocation14_spill]] %s3934_s26  ;;  %s35_s17 = sadd.s32 1, %s3970_s12 }
  0x16   : > { %5454 = sst [smem:[#allocation15_spill]] %s3966_s11  ;;  %s38_s18 = sadd.s32 1, %s3974_s13 }
  0x17   : > { %p36_p0 = scmp.ge.s32.totalorder %s35_s17, 2  ;;  %s5428_s19 = sshll.u32 %s3970_s12, 2 }
  0x18   : > { %s3061_s20 = sadd.s32 4294967295, %s5428_s19  ;;  %s83_s21 = sadd.s32 1, %s3958_s9 }
  0x19   : > { %s5509_s17 = smov (%p36_p0, %s35_s17), 0  ;;  %s5511_s18 = smov (!%p36_p0, %s38_s18), %s3974_s13 }
  0x1a   : > { %5455 = sst [smem:[#allocation16_spill]] %s5509_s17  ;;  %p72_p1 = scmp.gt.s32.totalorder %s3061_s20, 0 }
  0x1b   : > { %s5429_s22 = sshll.u32 %s5509_s17, 2  ;;  %p40_p2 = scmp.ge.s32.totalorder %s5511_s18, 2 }
  0x1c   : > { %s3063_s23 = sadd.s32 4294967295, %s5429_s22  ;;  %s5513_s20 = smov (!%p72_p1, %s3061_s20), 0 }
  0x1d   : > { %s5515_s18 = smov (%p40_p2, %s5511_s18), 0  ;;  %p76_p3 = scmp.gt.s32.totalorder %s3063_s23, 0 }
  0x1e   : > { %5456 = sst [smem:[#allocation17_spill]] %s5515_s18  ;;  %p90_p4 = scmp.ne.s32.totalorder %s3958_s9, %s3954_s8 }
  0x1f   : > { %s4123_s19 = ssub.s32 %s3974_s13, %s5515_s18  ;;  %p5438_p5 = scmp.eq.s32.totalorder %s3978_s14, 0 }
  0x20   : > { %s5517_s23 = smov (!%p76_p3, %s3063_s23), 0  ;;  %p96_p7 = scmp.ne.s32.totalorder %s3954_s8, %s3950_s30 }
  0x21   : > { %p4128_p6 = por %p5438_p5, %p90_p4  ;;  %s79_s16 = ssub.s32 %s5513_s20, %s5517_s23 }
  0x22   : > { %p4137_p8 = scmp.eq.s32.totalorder %s3058_s15, 0  ;;  %s80_s7 = sor.u32 %s79_s16, %s4123_s19 }
  0x23   : > { %s227_s6 = ssub.s32 %s3970_s12, %s5509_s17  ;;  %p81_p9 = scmp.eq.s32.totalorder %s80_s7, 0 }
  0x24   : > { %p4146_p10 = por %p4137_p8, %p96_p7  ;;  %s228_s30 = sor.u32 %s227_s6, %s4123_s19 }
  0x25   : > { %s231_s23 = sadd.s32 1, %s3934_s26  ;;  %p229_p11 = scmp.eq.s32.totalorder %s228_s30, 0 }
  0x26   : > { %s5459_s5 = scalar_select %p4146_p10, 1, 0 }
  0x27   : > { %s4153_s4 = scalar_select %p81_p9, %s3958_s9, %s83_s21  }
  0x28   : > { %p241_p12 = scmp.ne.s32.totalorder %s3934_s26, %s3930_s25  ;;  %p242_p13 = scmp.eq.s32.totalorder %s3058_s15, 3 }
  0x29   : > { %5460 = sst [smem:[#allocation18_spill]] %s4153_s4  ;;  %p247_p0 = scmp.ne.s32.totalorder %s3930_s25, %s3926_s24 }
  0x2a   : > { %s4162_s7 = scalar_select %p229_p11, %s3934_s26, %s231_s23  }
  0x2b   : > { %p4164_p1 = por %p242_p13, %p241_p12  ;;  %s5463_s0 = sadd.s32 4294967294, %s3978_s14  }
  0x2c   : > { %5461 = sst [smem:[#allocation19_spill]] %s4162_s7  ;;  %p248_p2 = scmp.eq.s32.totalorder %s5463_s0, 3 }
  0x2d   : > { %s5462_s16 = scalar_select %p4164_p1, 1, 0 }
  0x2e   : > { %p5437_p3 = scmp.lt.s32.totalorder %s3978_s14, 4  ;;  %p4171_p4 = por %p248_p2, %p247_p0 }
  0x2f   : > { %s294_s21 = sand.u32 1, %s3958_s9   ;;  %s3194_s4 = sshll.u32 %s5513_s20, 2 }
  0x30   : > { %s5464_s6 = scalar_select %p4171_p4, 1, 0 }
  0x31   : > { %s3068_s30 = sshll.u32 %s294_s21, 5  ;;  %s3073_s15 = sshll.u32 %s3974_s13, 5 }
  0x32   : > { %s298_s3 = scalar_lea.vmem [#allocation4], %s3068_s30  ;;  %s309_s23 = sadd.s32 %s3194_s4, %s3073_s15 }
  0x33   : > { %s312_s11 = sshll.u32 %s298_s3, 4  ;;  %s3074_s7 = sshll.u32 %s309_s23, 7  ;;  %s4180_s11 = int_to_ptr.vmem [resolvable:$true] %s312_s11 }
  0x34   : > { %p4186_p7 = pnand %p5437_p3, %p4128_p6  ;;  %s5466_s1 = sld [smem:[#allocation21_spill]] }
  0x35   : > { %s4195_s3 = scalar_lea.sflag [#allocation5], %s294_s21 }
  0x36   : > { %p3770_p6 = pneg %p4186_p7 }
  0x3a   : > { %s4193_s20 = scalar_lea.hbm %s5466_s1, %s3074_s7  ;;  %s3773_s26 = scalar_lea.hbm %s5466_s1, 8192 }
  0x3b   : > { %s3768_s4 = scalar_lea.hbm %s4193_s20, 512  ;;  %p3774_p13 = scmp.lt.u32.totalorder %s4193_s20, %s5466_s1 }
  0x3c   : > { %p3769_p9 = scmp.ne.s32.totalorder %s4193_s20, %s3768_s4  ;;  %p3775_p0 = scmp.lt.u32.totalorder %s3773_s26, %s3768_s4 }
  0x3d   : > { %p3777_p3 = scmp.lt.u32.totalorder %s3768_s4, %s4193_s20 }
  0x3e   : > { %p3771_p11 = pnand %p3770_p6, %p3769_p9  ;;  %p3776_p2 = por %p3775_p0, %p3774_p13 }
  0x40   : > { %p3772_p12 = pneg %p3771_p11  ;;  %p3778_p5 = por %p3777_p3, %p3776_p2 }
  0x42   : > { %p3779_p4 = pnand %p3778_p5, %p3772_p12 }
  0x44   : > { %3782 = shalt.err (!%p3779_p4)
}
  0x45   : > { %s3783_s21 = scalar_lea.vmem %s4180_s11, 512  ;;  %s3980_s23 = smov [#allocation4]  }
  0x46   : > { %p3784_p9 = scmp.ne.s32.totalorder %s4180_s11, %s3783_s21  ;;  %s3788_s22 = sshll.u32 %s3980_s23, 4  ;;  %s3789_s22 = int_to_ptr.vmem [resolvable:$false] %s3788_s22 }
  0x47   : > { %s3790_s24 = scalar_lea.vmem %s3789_s22, 1024  ;;  %p3791_p10 = scmp.lt.s32.totalorder %s4180_s11, %s3789_s22 }
  0x48   : > { %p3786_p11 = pnand %p3784_p9, %p3770_p6  ;;  %p3792_p13 = scmp.lt.s32.totalorder %s3790_s24, %s3783_s21 }
  0x4a   : > { %p3787_p1 = pneg %p3786_p11  ;;  %p3793_p0 = por %p3792_p13, %p3791_p10 }
  0x4c   : > { %p3794_p3 = pnand %p3793_p0, %p3787_p1 }
  0x4e   : > { %3797 = shalt.err (!%p3794_p3)
}
  0x4f   : > { %s5441_s4 = smov 128   ;;  %s5442_s26 = smov 8  }
  0x50   : > { %3566 = dma.hbm_to_vmem [thread:$0]  (!%p4186_p7), %s4193_s20, 512, %s4180_s11, %s4195_s3, %s5441_s4, %s5441_s4, %s5442_s26  }
  0x51   : > { %p3081_p5 = scmp.ge.s32.totalorder %s3978_s14, 1  ;;  %p348_p10 = scmp.lt.s32.totalorder %s3978_s14, 5 }
  0x52   : > { %s5468_s30 = sshll.u32 %s3970_s12, 2  ;;  %s5469_s23 = sshll.u32 %s5509_s17, 2 }
  0x53   : > { %p4228_p1 = pnand %p3081_p5, %p348_p10  ;;  %s3191_s21 = sadd.s32 4, %s5468_s30 }
  0x54   : > { %p108_p4 = scmp.lt.s32.totalorder %s3191_s21, 7  ;;  %s3193_s22 = sadd.s32 4, %s5469_s23 }
  0x55   : > { %p112_p6 = scmp.lt.s32.totalorder %s3193_s22, 7  ;;  %s119_s0 = sadd.s32 1, %s3946_s29 }
  0x56   : > { %s5519_s21 = smov (!%p108_p4, %s3191_s21), 7  ;;  %p126_p7 = scmp.ne.s32.totalorder %s3946_s29, %s3942_s28 }
  0x57   : > { %s5521_s22 = smov (!%p112_p6, %s3193_s22), 7  ;;  %p132_p12 = scmp.ne.s32.totalorder %s3942_s28, %s3938_s27 }
  0x58   : > { %s115_s11 = ssub.s32 %s5519_s21, %s5521_s22  ;;  %s322_s20 = sand.u32 1, %s3946_s29  }
  0x59   : > { %s116_s3 = sor.u32 %s115_s11, %s4123_s19  ;;  %p5470_p2 = scmp.eq.s32.totalorder %s3978_s14, 0 }
  0x5a   : > { %p117_p11 = scmp.eq.s32.totalorder %s116_s3, 0  ;;  %p4247_p13 = por %p132_p12, %p4137_p8 }
  0x5b   : > { %p128_p9 = por %p126_p7, %p5470_p2  ;;  %s3075_s30 = sshll.u32 %s322_s20, 5 }
  0x5c   : > { %s5471_s24 = scalar_select %p4247_p13, 1, 0 }
  0x5d   : > { %s4252_s23 = scalar_select %p117_p11, %s3946_s29, %s119_s0  }
  0x5e   : > { %s3197_s4 = sshll.u32 %s5519_s21, 2  ;;  %s326_s1 = scalar_lea.vmem [#allocation7], %s3075_s30 }
  0x5f   : > { %s337_s26 = sadd.s32 %s3197_s4, %s3073_s15  ;;  %s340_s27 = sshll.u32 %s326_s1, 4  ;;  %s4256_s27 = int_to_ptr.vmem [resolvable:$true] %s340_s27 }
  0x60   : > { %s3080_s17 = sshll.u32 %s337_s26, 7  ;;  %p5472_p8 = scmp.lt.s32.totalorder %s3978_s14, 4 }
  0x61   : > { %s4261_s11 = scalar_lea.hbm %s5422_s2, %s3080_s17  ;;  %s4269_s1 = scalar_lea.sflag [#allocation8], %s322_s20 }
  0x62   : > { %p4265_p0 = pnand %p5472_p8, %p128_p9  ;;  %s3798_s15 = scalar_lea.hbm %s4261_s11, 512 }
  0x63   : > { %p3799_p3 = scmp.ne.s32.totalorder %s4261_s11, %s3798_s15  ;;  %s3803_s26 = scalar_lea.hbm %s5422_s2, 8192 }
  0x64   : > { %p3800_p5 = pneg %p4265_p0  ;;  %p3804_p6 = scmp.lt.u32.totalorder %s4261_s11, %s5422_s2 }
  0x65   : > { %p3805_p7 = scmp.lt.u32.totalorder %s3803_s26, %s3798_s15  ;;  %p3807_p2 = scmp.lt.u32.totalorder %s3798_s15, %s4261_s11 }
  0x66   : > { %p3801_p10 = pnand %p3800_p5, %p3799_p3 }
  0x67   : > { %p3806_p12 = por %p3805_p7, %p3804_p6 }
  0x68   : > { %p3802_p4 = pneg %p3801_p10 }
  0x69   : > { %p3808_p9 = por %p3807_p2, %p3806_p12 }
  0x6b   : > { %p3809_p11 = pnand %p3808_p9, %p3802_p4 }
  0x6d   : > { %3812 = shalt.err (!%p3809_p11)
}
  0x6e   : > { %s3813_s20 = scalar_lea.vmem %s4256_s27, 512  ;;  %s3983_s3 = smov [#allocation7]  }
  0x6f   : > { %p3814_p8 = scmp.ne.s32.totalorder %s4256_s27, %s3813_s20  ;;  %s3818_s30 = sshll.u32 %s3983_s3, 4  ;;  %s3819_s30 = int_to_ptr.vmem [resolvable:$false] %s3818_s30 }
  0x70   : > { %s3820_s19 = scalar_lea.vmem %s3819_s30, 1024  ;;  %p3821_p13 = scmp.lt.s32.totalorder %s4256_s27, %s3819_s30 }
  0x71   : > { %p3816_p3 = pnand %p3814_p8, %p3800_p5  ;;  %p3822_p6 = scmp.lt.s32.totalorder %s3820_s19, %s3813_s20 }
  0x73   : > { %p3817_p10 = pneg %p3816_p3  ;;  %p3823_p7 = por %p3822_p6, %p3821_p13 }
  0x75   : > { %p3824_p12 = pnand %p3823_p7, %p3817_p10 }
  0x77   : > { %3827 = shalt.err (!%p3824_p12)
}
  0x78   : > { %s5474_s22 = smov 8   ;;  %s5475_s15 = smov 128  }
  0x79   : > { %3569 = dma.hbm_to_vmem [thread:$0]  (!%p4265_p0), %s4261_s11, 512, %s4256_s27, %s4269_s1, %s5475_s15, %s5475_s15, %s5474_s22  }
  0x7a   : > { %352 = sbr.rel (%p4228_p1) target bundleno = 1073 (0x431), region = 48  ;;  %s354_s17 = sand.u32 (!%p4228_p1), 1, %s3954_s8  }
  0x7b   : > { %s3082_s4 = sshll.u32 (!%p4228_p1), %s354_s17, 5  ;;  %s355_s26 = scalar_lea.sflag (!%p4228_p1), [#allocation5], %s354_s17 }
  0x7c   : > { %s4303_s21 = scalar_lea.vmem (!%p4228_p1), [#allocation4], %s3082_s4  ;;  %p5476_p13 = scmp.ne.s32.totalorder (!%p4228_p1), %s5459_s5, 0 }
  0x81   : > { %3913 = dma.done.wait (%p5476_p13), %s355_s26, 512  }
  0x82   : > { %3915 = vsyncadd (%p5476_p13), %s355_s26, 4294966784  ;;  %s363_s18 = sand.u32 1, %s3942_s28   ;;  %p5477_p1 = scmp.ne.s32.totalorder %s5471_s24, 0 }
  0x83   : > { %s3083_s0 = sshll.u32 %s363_s18, 5  ;;  %s364_s27 = scalar_lea.sflag [#allocation8], %s363_s18 }
  0x84   : > { %s4310_s11 = scalar_lea.vmem [#allocation7], %s3083_s0 }
  0x85   : > { %3917 = dma.done.wait (%p5477_p1), %s364_s27, 512  }
  0x86   : > { %3919 = vsyncadd (%p5477_p1), %s364_s27, 4294966784  ;;  %vm436_vm0 = vcmask 516096   ;;  %p461_p0 = scmp.gt.s32.totalorder %s3962_s10, 0  ;;  %v3984_v0 = vmov 0.0   ;;  %s5478_s5 = sld [smem:[#allocation15_spill]]  ;;  %v485_v2 = vld [vmem:[%s4303_s21 + $0x10] sm:$0xff] }
  0x87   : > { %438 = vst.msk [vmem:[#allocation2 + $0x18] sm:$0x1] %vm436_vm0, %v3984_v0  ;;  %1763 = vst.msk [vmem:[#allocation3] sm:$0x1] %vm436_vm0, %v3984_v0  ;;  %s3085_s7 = sshll.u32 %s3962_s10, 3  ;;  %p464_p2 = scmp.lt.s32.totalorder %s3962_s10, 1 }
  0x88   : > { %1764 = vst.msk [vmem:[#allocation3 + $0x18] sm:$0x1] %vm436_vm0, %v3984_v0  ;;  %1765 = vst.msk [vmem:[#allocation3 + $0x30] sm:$0x1] %vm436_vm0, %v3984_v0  ;;  %s462_s24 = scalar_select %p461_p0, 1, 0 }
  0x89   : > { %1766 = vst.msk [vmem:[#allocation3 + $0x48] sm:$0x1] %vm436_vm0, %v3984_v0  ;;  %1767 = vst.msk [vmem:[#allocation3 + $0x60] sm:$0x1] %vm436_vm0, %v3984_v0  ;;  %p416_p4 = scmp.lt.s32.totalorder %s3085_s7, 15  ;;  %v486_v3 = vld [vmem:[%s4303_s21 + $0x18] sm:$0xff] }
  0x8a   : > { %1768 = vst.msk [vmem:[#allocation3 + $0x78] sm:$0x1] %vm436_vm0, %v3984_v0  ;;  %1769 = vst.msk [vmem:[#allocation3 + $0x90] sm:$0x1] %vm436_vm0, %v3984_v0  ;;  %s463_s1 = scvt.s32.f32 %s462_s24  ;;  %vm492_vm1 = vcmask 523264   ;;  %v483_v4 = vld [vmem:[%s4303_s21] sm:$0xff] }
  0x8b   : > { %1770 = vst.msk [vmem:[#allocation3 + $0xa8] sm:$0x1] %vm436_vm0, %v3984_v0  ;;  %1771 = vst.msk [vmem:[#allocation3 + $0xc0] sm:$0x1] %vm436_vm0, %v3984_v0  ;;  %s5525_s7 = smov (!%p416_p4, %s3085_s7), 15  ;;  %v484_v7 = vld [vmem:[%s4303_s21 + $0x8] sm:$0xff] }
  0x8c   : > { %1772 = vst.msk [vmem:[#allocation3 + $0xd8] sm:$0x1] %vm436_vm0, %v3984_v0  ;;  %1773 = vst.msk [vmem:[#allocation3 + $0x11] sm:$0x1] %vm436_vm0, %v3984_v0  ;;  %p414_p5 = scmp.lt.s32.totalorder %s5478_s5, 1  ;;  %v487_v1 = vstv %s463_s1  ;;  %s3086_s30 = sshll.u32 %s5525_s7, 1 }
  0x8d   : > { %1774 = vst.msk [vmem:[#allocation3 + $0x29] sm:$0x1] %vm436_vm0, %v3984_v0  ;;  %1775 = vst.msk [vmem:[#allocation3 + $0x41] sm:$0x1] %vm436_vm0, %v3984_v0  ;;  %s465_s3 = scalar_select %p464_p2, 1, 0  ;;  %v490_v5 = vmul.f32 %v487_v1, %v485_v2  ;;  %v491_v6 = vmul.f32 %v487_v1, %v486_v3  ;;  %v488_v8 = vmul.f32 %v487_v1, %v483_v4 }
  0x8e   : > { %1776 = vst.msk [vmem:[#allocation3 + $0x59] sm:$0x1] %vm436_vm0, %v3984_v0  ;;  %1777 = vst.msk [vmem:[#allocation3 + $0x71] sm:$0x1] %vm436_vm0, %v3984_v0  ;;  %s5523_s5 = smov (!%p414_p5, %s5478_s5), 1  ;;  %v514_v9 = vld [vmem:[%s4310_s11] sm:$0xff]  ;;  %v489_v11 = vmul.f32 %v487_v1, %v484_v7 }
  0x8f   : > { %1778 = vst.msk [vmem:[#allocation3 + $0x89] sm:$0x1] %vm436_vm0, %v3984_v0  ;;  %1779 = vst.msk [vmem:[#allocation3 + $0xa1] sm:$0x1] %vm436_vm0, %v3984_v0  ;;  %s3087_s20 = sshll.u32 %s5523_s5, 5  ;;  %v515_v10 = vld [vmem:[%s4310_s11 + $0x8] sm:$0xff]  ;;  %s466_s15 = scvt.s32.f32 %s465_s3 }
  0x90   : > { %1780 = vst.msk [vmem:[#allocation3 + $0xb9] sm:$0x1] %vm436_vm0, %v3984_v0  ;;  %1781 = vst.msk [vmem:[#allocation3 + $0xd1] sm:$0x1] %vm436_vm0, %v3984_v0  ;;  %s410_s19 = sand.u32 1, %s3930_s25   ;;  %s420_s22 = sadd.s32 %s3087_s20, %s3086_s30 }
  0x91   : > { %1782 = vst.msk [vmem:[#allocation3 + $0xe9] sm:$0x1] %vm436_vm0, %v3984_v0  ;;  %437 = vst.msk [vmem:[#allocation2] sm:$0x1] %vm436_vm0, %v3984_v0  ;;  %s5479_s26 = sld [smem:[#allocation22_spill]]  ;;  %s3088_s0 = sshll.u32 %s420_s22, 3  ;;  %v4390_v13 = vstv %s466_s15 }
  0x92   : > { %439 = vst.msk [vmem:[#allocation2 + $0x30] sm:$0x1] %vm436_vm0, %v3984_v0  ;;  %440 = vst.msk [vmem:[#allocation2 + $0x48] sm:$0x1] %vm436_vm0, %v3984_v0  ;;  %s4382_s21 = sshll.u32 %s410_s19, 7  ;;  %s5481_s7 = sld [smem:[#allocation20_spill]]  ;;  %v519_v18 = vmul.f32 %v4390_v13, %v514_v9  ;;  %v520_v19 = vmul.f32 %v4390_v13, %v515_v10 }
  0x93   : > { %441 = vst.msk [vmem:[#allocation2 + $0x60] sm:$0x1] %vm436_vm0, %v3984_v0  ;;  %442 = vst.msk [vmem:[#allocation2 + $0x78] sm:$0x1] %vm436_vm0, %v3984_v0  ;;  %s3985_s3 = smov 64   ;;  %v517_v9 = vld [vmem:[%s4310_s11 + $0x18] sm:$0xff] }
  0x94   : > { %443 = vst.msk [vmem:[#allocation2 + $0x90] sm:$0x1] %vm436_vm0, %v3984_v0  ;;  %444 = vst.msk [vmem:[#allocation2 + $0xa8] sm:$0x1] %vm436_vm0, %v3984_v0  ;;  %s5482_s30 = sld [smem:[#allocation23_spill]]  ;;  %s4925_s22 = scalar_lea.vmem [#allocation9], %s4382_s21 }
  0x95   : > { %445 = vst.msk [vmem:[#allocation2 + $0xc0] sm:$0x1] %vm436_vm0, %v3984_v0  ;;  %446 = vst.msk [vmem:[#allocation2 + $0xd8] sm:$0x1] %vm436_vm0, %v3984_v0  ;;  %p3136_p9 = scmp.ne.s32.totalorder %s3962_s10, 0 }
  0x96   : > { %447 = vst.msk [vmem:[#allocation2 + $0xf0] sm:$0x1] %vm436_vm0, %v3984_v0  ;;  %448 = vst.msk [vmem:[#allocation2 + $0x108] sm:$0x1] %vm436_vm0, %v3984_v0  ;;  %vm1809_vm2 = vcmask (!%p3136_p9), 517120  }
  0x97   : > { %449 = vst.msk [vmem:[#allocation2 + $0x11] sm:$0x1] %vm436_vm0, %v3984_v0  ;;  %450 = vst.msk [vmem:[#allocation2 + $0x29] sm:$0x1] %vm436_vm0, %v3984_v0  ;;  %s5480_s18 = smov %s5479_s26  ;;  %v3696_v12 = vld [vmem:[%s5479_s26 + $0x40] sm:$0xff]  }
  0x98   : > { %451 = vst.msk [vmem:[#allocation2 + $0x41] sm:$0x1] %vm436_vm0, %v3984_v0  ;;  %452 = vst.msk [vmem:[#allocation2 + $0x59] sm:$0x1] %vm436_vm0, %v3984_v0  ;;  %s4387_s24 = scalar_lea.vmem %s5481_s7, %s3088_s0  ;;  %3199 = vmatprep.subr.bf16.mxu0 %v3696_v12  ;;  %v3697_v14 = vld [vmem:[%s5480_s18] sm:$0xff]   ;;  %v3698_v3 = vld [vmem:[%s5480_s18 + $0x48] sm:$0xff]   ;;  %v522_v12 = vmul.f32 %v4390_v13, %v517_v9 }
  0x99   : > { %453 = vst.msk [vmem:[#allocation2 + $0x71] sm:$0x1] %vm436_vm0, %v3984_v0  ;;  %454 = vst.msk [vmem:[#allocation2 + $0x89] sm:$0x1] %vm436_vm0, %v3984_v0  ;;  %v4396_v15 = vld [vmem:[%s4387_s24] sm:$0xff]  ;;  %v4399_v16 = vld [vmem:[%s4387_s24 + $0x8] sm:$0xff]  ;;  %3200 = vmatpush3.bf16.msra.mxu0 %v3697_v14 }
  0x9a   : > { %455 = vst.msk [vmem:[#allocation2 + $0xa1] sm:$0x1] %vm436_vm0, %v3984_v0  ;;  %456 = vst.msk [vmem:[#allocation2 + $0xb9] sm:$0x1] %vm436_vm0, %v3984_v0  ;;  %v4402_v17 = vld [vmem:[%s4387_s24 + $0x10] sm:$0xff]  ;;  %v4411_v20 = vld [vmem:[%s4387_s24 + $0x18] sm:$0xff]  ;;  %3201 = vmatprep.subr.bf16.mxu0 %v3698_v3 }
  0x9b   : > { %457 = vst.msk [vmem:[#allocation2 + $0xd1] sm:$0x1] %vm436_vm0, %v3984_v0  ;;  %458 = vst.msk [vmem:[#allocation2 + $0xe9] sm:$0x1] %vm436_vm0, %v3984_v0  ;;  %v4416_v21 = vld [vmem:[%s4387_s24 + $0x20] sm:$0xff]  ;;  %v4419_v22 = vld [vmem:[%s4387_s24 + $0x28] sm:$0xff] }
  0x9c   : > { %459 = vst.msk [vmem:[#allocation2 + $0x101] sm:$0x1] %vm436_vm0, %v3984_v0  ;;  %460 = vst.msk [vmem:[#allocation2 + $0x119] sm:$0x1] %vm436_vm0, %v3984_v0  ;;  %v4428_v23 = vld [vmem:[%s4387_s24 + $0x30] sm:$0xff]  ;;  %v4431_v24 = vld [vmem:[%s4387_s24 + $0x38] sm:$0xff] }
  0x9d   : > { %495 = vst.msk [vmem:[#allocation2 + $0x19] sm:$0xff] %vm492_vm1, %v490_v5  ;;  %496 = vst.msk [vmem:[#allocation2 + $0x21] sm:$0xff] %vm492_vm1, %v491_v6  ;;  %v4434_v25 = vld [vmem:[%s4387_s24 + $0x40] sm:$0xff]  ;;  %v4443_v26 = vld [vmem:[%s4387_s24 + $0x48] sm:$0xff] }
  0x9e   : > { %493 = vst.msk [vmem:[#allocation2 + $0x1] sm:$0xff] %vm492_vm1, %v488_v8  ;;  %494 = vst.msk [vmem:[#allocation2 + $0x9] sm:$0xff] %vm492_vm1, %v489_v11  ;;  %v4448_v27 = vld [vmem:[%s4387_s24 + $0x50] sm:$0xff]  ;;  %v4451_v28 = vld [vmem:[%s4387_s24 + $0x58] sm:$0xff] }
  0x9f   : > { %498 = vst.msk [vmem:[#allocation2 + $0x31] sm:$0xff] %vm492_vm1, %v4396_v15  ;;  %499 = vst.msk [vmem:[#allocation2 + $0x39] sm:$0xff] %vm492_vm1, %v4399_v16  ;;  %v4460_v29 = vld [vmem:[%s4387_s24 + $0x60] sm:$0xff]  ;;  %v4463_v30 = vld [vmem:[%s4387_s24 + $0x68] sm:$0xff] }
  0xa0   : > { %500 = vst.msk [vmem:[#allocation2 + $0x49] sm:$0xff] %vm492_vm1, %v4402_v17  ;;  %501 = vst.msk [vmem:[#allocation2 + $0x51] sm:$0xff] %vm492_vm1, %v4411_v20  ;;  %v4466_v31 = vld [vmem:[%s4387_s24 + $0x70] sm:$0xff]  ;;  %v4477_v38 = vld [vmem:[%s4387_s24 + $0x78] sm:$0xff] }
  0xa1   : > { %502 = vst.msk [vmem:[#allocation2 + $0x61] sm:$0xff] %vm492_vm1, %v4416_v21  ;;  %503 = vst.msk [vmem:[#allocation2 + $0x69] sm:$0xff] %vm492_vm1, %v4419_v22  ;;  %v3699_v4 = vld [vmem:[%s5480_s18 + $0x8] sm:$0xff]   ;;  %v516_v5 = vld [vmem:[%s4310_s11 + $0x10] sm:$0xff] }
  0xa2   : > { %524 = vst.msk [vmem:[#allocation2 + $0xf1] sm:$0xff] %vm492_vm1, %v519_v18  ;;  %525 = vst.msk [vmem:[#allocation2 + $0xf9] sm:$0xff] %vm492_vm1, %v520_v19  ;;  %v521_v10 = vmul.f32 %v4390_v13, %v516_v5  ;;  %3202 = vmatpush3.bf16.msra.mxu0 %v3699_v4  ;;  %v3700_v14 = vld [vmem:[%s5480_s18 + $0x50] sm:$0xff]   ;;  %v3716_v9 = vld [vmem:[%s5480_s18 + $0x78] sm:$0xff]  }
  0xa3   : > { %504 = vst.msk [vmem:[#allocation2 + $0x79] sm:$0xff] %vm492_vm1, %v4428_v23  ;;  %505 = vst.msk [vmem:[#allocation2 + $0x81] sm:$0xff] %vm492_vm1, %v4431_v24  ;;  %v3701_v18 = vld [vmem:[%s5480_s18 + $0x10] sm:$0xff]   ;;  %3203 = vmatprep.subr.bf16.mxu0 %v3700_v14 }
  0xa4   : > { %506 = vst.msk [vmem:[#allocation2 + $0x91] sm:$0xff] %vm492_vm1, %v4434_v25  ;;  %507 = vst.msk [vmem:[#allocation2 + $0x99] sm:$0xff] %vm492_vm1, %v4443_v26  ;;  %v619_v32 = vld [vmem:[#allocation2 + $0x18] sm:$0xff]  ;;  %v620_v33 = vld [vmem:[#allocation2 + $0x20] sm:$0xff] }
  0xa5   : > { %508 = vst.msk [vmem:[#allocation2 + $0xa9] sm:$0xff] %vm492_vm1, %v4448_v27  ;;  %509 = vst.msk [vmem:[#allocation2 + $0xb1] sm:$0xff] %vm492_vm1, %v4451_v28  ;;  %v558_v34 = vld [vmem:[#allocation2 + $0x1] sm:$0xff]  ;;  %v4474_v35 = vpack.c.bf16 %v620_v33, %v619_v32  ;;  %v559_v36 = vld [vmem:[#allocation2 + $0x9] sm:$0xff] }
  0xa6   : > { %510 = vst.msk [vmem:[#allocation2 + $0xc1] sm:$0xff] %vm492_vm1, %v4460_v29  ;;  %511 = vst.msk [vmem:[#allocation2 + $0xc9] sm:$0xff] %vm492_vm1, %v4463_v30  ;;  %v560_v37 = vld [vmem:[#allocation2 + $0x19] sm:$0xff]  ;;  %v621_v39 = vld [vmem:[#allocation2 + $0x30] sm:$0xff]  ;;  %v578_v41 = vpack.c.bf16 %v559_v36, %v558_v34  ;;  %3204 = vmatpush3.bf16.msra.mxu0 %v3701_v18 }
  0xa7   : > { %512 = vst.msk [vmem:[#allocation2 + $0xd9] sm:$0xff] %vm492_vm1, %v4466_v31  ;;  %839 = vrot.lane.b32.xlu0 %v4474_v35, %s3985_s3  ;;  %v622_v40 = vld [vmem:[#allocation2 + $0x38] sm:$0xff]  ;;  %v561_v42 = vld [vmem:[#allocation2 + $0x21] sm:$0xff]  ;;  %513 = vst.msk [vmem:[#allocation2 + $0xe1] sm:$0xff] %vm492_vm1, %v4477_v38 }
  0xa8   : > { %v4483_v43 = vpack.c.bf16 %v622_v40, %v621_v39  ;;  %v623_v44 = vld [vmem:[#allocation2 + $0x48] sm:$0xff]  ;;  %v624_v45 = vld [vmem:[#allocation2 + $0x50] sm:$0xff]  ;;  %v4487_v46 = vpack.c.bf16 %v561_v42, %v560_v37  ;;  %v563_v49 = vld [vmem:[#allocation2 + $0x39] sm:$0xff]  ;;  %526 = vst.msk [vmem:[#allocation2 + $0x109] sm:$0xff] %vm492_vm1, %v521_v10 }
  0xa9   : > { %v4490_v47 = vpack.c.bf16 %v624_v45, %v623_v44  ;;  %v562_v48 = vld [vmem:[#allocation2 + $0x31] sm:$0xff]  ;;  %v625_v50 = vld [vmem:[#allocation2 + $0x60] sm:$0xff]  ;;  %v626_v51 = vld [vmem:[#allocation2 + $0x68] sm:$0xff]  ;;  %527 = vst.msk [vmem:[#allocation2 + $0x111] sm:$0xff] %vm492_vm1, %v522_v12 }
  0xaa   : > { %841 = vrot.lane.b32.xlu1 %v4483_v43, %s3985_s3  ;;  %v4494_v52 = vpack.c.bf16 %v563_v49, %v562_v48  ;;  %v4498_v53 = vpack.c.bf16 %v626_v51, %v625_v50  ;;  %v564_v54 = vld [vmem:[#allocation2 + $0x49] sm:$0xff]  ;;  %v565_v55 = vld [vmem:[#allocation2 + $0x51] sm:$0xff]  ;;  %v628_v57 = vld [vmem:[#allocation2 + $0x80] sm:$0xff] }
  0xab   : > { %809 = vrot.lane.b32.xlu0 %v578_v41, %s3985_s3  ;;  %v627_v56 = vld [vmem:[#allocation2 + $0x78] sm:$0xff]  ;;  %v4502_v58 = vpack.c.bf16 %v565_v55, %v564_v54  ;;  %v566_v60 = vld [vmem:[#allocation2 + $0x61] sm:$0xff]  ;;  %v567_v61 = vld [vmem:[#allocation2 + $0x69] sm:$0xff] }
  0xac   : > { %v4506_v59 = vpack.c.bf16 %v628_v57, %v627_v56  ;;  %v4510_v62 = vpack.c.bf16 %v567_v61, %v566_v60  ;;  %v679_v63 = vld [vmem:[#allocation2 + $0x1a] sm:$0xff]  ;;  %v680_v0 = vld [vmem:[#allocation2 + $0x22] sm:$0xff]  ;;  %v629_v1 = vld [vmem:[#allocation2 + $0x90] sm:$0xff] }
  0xad   : > { %v630_v2 = vld [vmem:[#allocation2 + $0x98] sm:$0xff]  ;;  %v4523_v6 = vpack.c.bf16 %v680_v0, %v679_v63  ;;  %v569_v8 = vld [vmem:[#allocation2 + $0x81] sm:$0xff]  ;;  %v632_v36 = vld [vmem:[#allocation2 + $0xb0] sm:$0xff] }
  0xae   : > { %811 = vrot.lane.b32.xlu1 %v4487_v46, %s3985_s3  ;;  %v568_v7 = vld [vmem:[#allocation2 + $0x79] sm:$0xff]  ;;  %v4529_v11 = vpack.c.bf16 %v630_v2, %v629_v1  ;;  %v631_v34 = vld [vmem:[#allocation2 + $0xa8] sm:$0xff]  ;;  %v570_v40 = vld [vmem:[#allocation2 + $0x91] sm:$0xff] }
  0xaf   : > { %843 = vrot.lane.b32.xlu0 %v4490_v47, %s3985_s3  ;;  %v681_v19 = vld [vmem:[#allocation2 + $0x32] sm:$0xff]  ;;  %v682_v32 = vld [vmem:[#allocation2 + $0x3a] sm:$0xff]  ;;  %v4545_v13 = vpack.c.bf16 %v569_v8, %v568_v7  ;;  %v4567_v48 = vpack.c.bf16 %v632_v36, %v631_v34  ;;  %v3708_v50 = vld [vmem:[%s5480_s18 + $0x68] sm:$0xff]  }
  0xb0   : > { %v3702_v33 = vld [vmem:[%s5480_s18 + $0x58] sm:$0xff]   ;;  %v3704_v39 = vld [vmem:[%s5480_s18 + $0x60] sm:$0xff]   ;;  %v4560_v44 = vpack.c.bf16 %v682_v32, %v681_v19  ;;  %v683_v51 = vld [vmem:[#allocation2 + $0x4a] sm:$0xff] }
  0xb1   : > { %v3703_v37 = vld [vmem:[%s5480_s18 + $0x18] sm:$0xff]   ;;  %3205 = vmatprep.subr.bf16.mxu0 %v3702_v33  ;;  %v3706_v42 = vld [vmem:[%s5480_s18 + $0xc0] sm:$0xff]   ;;  %v3709_v55 = vld [vmem:[%s5480_s18 + $0x28] sm:$0xff]  }
  0xb2   : > { %813 = vrot.lane.b32.xlu1 %v4494_v52, %s3985_s3  ;;  %v571_v41 = vld [vmem:[#allocation2 + $0x99] sm:$0xff]  ;;  %3206 = vmatpush3.bf16.msra.mxu0 %v3703_v37  ;;  %v634_v60 = vld [vmem:[#allocation2 + $0xc8] sm:$0xff]  ;;  %v3712_v0 = vld [vmem:[%s5480_s18 + $0x70] sm:$0xff]  }
  0xb3   : > { %845 = vrot.lane.b32.xlu0 %v4498_v53, %s3985_s3  ;;  %v3707_v45 = vld [vmem:[%s5480_s18 + $0x80] sm:$0xff]   ;;  %3207 = vmatprep.subr.bf16.mxu0 %v3704_v39  ;;  %v684_v54 = vld [vmem:[#allocation2 + $0x52] sm:$0xff]  ;;  %v4580_v56 = vpack.c.bf16 %v571_v41, %v570_v40  ;;  %v3710_v61 = vld [vmem:[%s5480_s18 + $0xc8] sm:$0xff]  }
  0xb4   : > { %v3705_v49 = vld [vmem:[%s5480_s18 + $0x20] sm:$0xff]   ;;  %3275 = vmatprep.subr.bf16.mxu1 %v3706_v42  ;;  %v3711_v63 = vld [vmem:[%s5480_s18 + $0x88] sm:$0xff]   ;;  %v573_v2 = vld [vmem:[#allocation2 + $0xb1] sm:$0xff]  ;;  %v4598_v4 = vpack.c.bf16 %v684_v54, %v683_v51 }
  0xb5   : > { %3276 = vmatpush3.bf16.msra.mxu1 %v3707_v45  ;;  %v633_v57 = vld [vmem:[#allocation2 + $0xc0] sm:$0xff]  ;;  %v572_v1 = vld [vmem:[#allocation2 + $0xa9] sm:$0xff]  ;;  %v635_v18 = vld [vmem:[#allocation2 + $0xd8] sm:$0xff] }
  0xb6   : > { %815 = vrot.lane.b32.xlu1 %v4502_v58, %s3985_s3  ;;  %3208 = vmatpush3.bf16.msra.mxu0 %v3705_v49  ;;  %v3713_v3 = vld [vmem:[%s5480_s18 + $0x30] sm:$0xff]   ;;  %v4605_v7 = vpack.c.bf16 %v634_v60, %v633_v57  ;;  %v685_v10 = vld [vmem:[#allocation2 + $0x62] sm:$0xff]  ;;  %v4615_v14 = vpack.c.bf16 %v573_v2, %v572_v1  ;;  %v3717_v32 = vld [vmem:[%s5480_s18 + $0x38] sm:$0xff]  }
  0xb7   : > { %847 = vrot.lane.b32.xlu0 %v4506_v59, %s3985_s3  ;;  %3209 = vmatprep.subr.bf16.mxu0 %v3708_v50  ;;  %v3714_v5 = vld [vmem:[%s5480_s18 + $0xd0] sm:$0xff]   ;;  %v636_v19 = vld [vmem:[#allocation2 + $0xe0] sm:$0xff]  ;;  %v3718_v33 = vld [vmem:[%s5480_s18 + $0xd8] sm:$0xff]  }
  0xb8   : > { %3277 = vmatprep.subr.bf16.mxu1 %v3710_v61  ;;  %v3715_v8 = vld [vmem:[%s5480_s18 + $0x90] sm:$0xff]   ;;  %v3719_v34 = vld [vmem:[%s5480_s18 + $0x98] sm:$0xff]   ;;  %v574_v36 = vld [vmem:[#allocation2 + $0xc1] sm:$0xff]  ;;  %v4642_v42 = vpack.c.bf16 %v636_v19, %v635_v18 }
  0xb9   : > { %3278 = vmatpush3.bf16.msra.mxu1 %v3711_v63  ;;  %v686_v12 = vld [vmem:[#allocation2 + $0x6a] sm:$0xff]  ;;  %v4631_v39 = vld [vmem:[%s5480_s18 + $0x100] sm:$0xff]   ;;  %v638_v61 = vld [vmem:[#allocation2 + $0xf8] sm:$0xff] }
  0xba   : > { %817 = vrot.lane.b32.xlu1 %v4510_v62, %s3985_s3  ;;  %3210 = vmatpush3.bf16.msra.mxu0 %v3709_v55  ;;  %v575_v37 = vld [vmem:[#allocation2 + $0xc9] sm:$0xff]  ;;  %v4635_v40 = vpack.c.bf16 %v686_v12, %v685_v10  ;;  %v3721_v41 = vld [vmem:[%s5480_s18 + $0xe0] sm:$0xff]   ;;  %v689_v10 = vld [vmem:[#allocation2 + $0x92] sm:$0xff] }
  0xbb   : > { %899 = vrot.lane.b32.xlu0 %v4494_v52, %s3985_s3  ;;  %3211 = vmatprep.subr.bf16.mxu0 %v3712_v0  ;;  %v3722_v45 = vld [vmem:[%s5480_s18 + $0xa0] sm:$0xff]   ;;  %v3723_v49 = vld [vmem:[%s5480_s18 + $0xe8] sm:$0xff]   ;;  %v4653_v54 = vpack.c.bf16 %v575_v37, %v574_v36  ;;  %v637_v55 = vld [vmem:[#allocation2 + $0xf0] sm:$0xff] }
  0xbc   : > { %3279 = vmatprep.subr.bf16.mxu1 %v3714_v5  ;;  %v687_v50 = vld [vmem:[#allocation2 + $0x7a] sm:$0xff]  ;;  %v688_v51 = vld [vmem:[#allocation2 + $0x82] sm:$0xff]  ;;  %v3725_v60 = vld [vmem:[%s5480_s18 + $0xf0] sm:$0xff]  }
  0xbd   : > { %3280 = vmatpush3.bf16.msra.mxu1 %v3715_v8  ;;  %v3724_v57 = vld [vmem:[%s5480_s18 + $0xa8] sm:$0xff]   ;;  %v576_v63 = vld [vmem:[#allocation2 + $0xd9] sm:$0xff]  ;;  %v4665_v1 = vpack.c.bf16 %v688_v51, %v687_v50  ;;  %v3726_v2 = vld [vmem:[%s5480_s18 + $0xb0] sm:$0xff]  }
  0xbe   : > { %869 = vrot.lane.b32.xlu1 %v4523_v6, %s3985_s3  ;;  %3212 = vmatpush3.bf16.msra.mxu0 %v3713_v3  ;;  %v577_v0 = vld [vmem:[#allocation2 + $0xe1] sm:$0xff]  ;;  %v4672_v3 = vpack.c.bf16 %v638_v61, %v637_v55  ;;  %v3727_v5 = vld [vmem:[%s5480_s18 + $0xf8] sm:$0xff]   ;;  %v691_v19 = vld [vmem:[#allocation2 + $0xaa] sm:$0xff] }
  0xbf   : > { %849 = vrot.lane.b32.xlu0 %v4529_v11, %s3985_s3  ;;  %3213 = vmatprep.subr.bf16.mxu0 %v3716_v9  ;;  %v4679_v8 = vpack.c.bf16 %v577_v0, %v576_v63  ;;  %v3728_v9 = vld [vmem:[%s5480_s18 + $0xb8] sm:$0xff]   ;;  %v694_v36 = vld [vmem:[#allocation2 + $0xca] sm:$0xff]  ;;  %v696_v51 = vld [vmem:[#allocation2 + $0xe2] sm:$0xff] }
  0xc0   : > { %3281 = vmatprep.subr.bf16.mxu1 %v3718_v33  ;;  %v690_v12 = vld [vmem:[#allocation2 + $0x9a] sm:$0xff]  ;;  %v755_v37 = vld [vmem:[#allocation2 + $0xf1] sm:$0xff]  ;;  %v757_v55 = vld [vmem:[#allocation2 + $0x109] sm:$0xff] }
  0xc1   : > { %3282 = vmatpush3.bf16.msra.mxu1 %v3719_v34  ;;  %v4688_v18 = vpack.c.bf16 %v690_v12, %v689_v10  ;;  %v693_v34 = vld [vmem:[#allocation2 + $0xc2] sm:$0xff]  ;;  %v695_v50 = vld [vmem:[#allocation2 + $0xda] sm:$0xff]  ;;  %v697_v63 = vld [vmem:[#allocation2 + $0xf2] sm:$0xff] }
  0xc2   : > { %819 = vrot.lane.b32.xlu1 %v4545_v13, %s3985_s3  ;;  %3214 = vmatpush3.bf16.msra.mxu0 %v3717_v32  ;;  %v692_v32 = vld [vmem:[#allocation2 + $0xb2] sm:$0xff]  ;;  %v698_v0 = vld [vmem:[#allocation2 + $0xfa] sm:$0xff] }
  0xc3   : > { %901 = vrot.lane.b32.xlu0 %v4502_v58, %s3985_s3  ;;  %3505 = vmatprep.subr.bf16.mxu0 %v4631_v39  ;;  %v4694_v33 = vpack.c.bf16 %v692_v32, %v691_v19  ;;  %v528_v12 = vld [vmem:[#allocation2] sm:$0xff]  ;;  %v529_v19 = vld [vmem:[#allocation2 + $0x8] sm:$0xff] }
  0xc4   : > { %3283 = vmatprep.subr.bf16.mxu1 %v3721_v41  ;;  %v756_v41 = vld [vmem:[#allocation2 + $0xf9] sm:$0xff] }
  0xc5   : > { %3284 = vmatpush3.bf16.msra.mxu1 %v3722_v45  ;;  %v4700_v45 = vpack.c.bf16 %v694_v36, %v693_v34  ;;  %v548_v36 = vpack.c.bf16 %v529_v19, %v528_v12 }
  0xc6   : > { %871 = vrot.lane.b32.xlu1 %v4560_v44, %s3985_s3  ;;  %3285 = vmatprep.subr.bf16.mxu1 %v3723_v49  ;;  %v4704_v49 = vpack.c.bf16 %v756_v41, %v755_v37 }
  0xc7   : > { %851 = vrot.lane.b32.xlu0 %v4567_v48, %s3985_s3 }
  0xc9   : > { %3286 = vmatpush3.bf16.msra.mxu1 %v3724_v57  ;;  %v758_v57 = vld [vmem:[#allocation2 + $0x111] sm:$0xff] }
  0xca   : > { %821 = vrot.lane.b32.xlu1 %v4580_v56, %s3985_s3  ;;  %3287 = vmatprep.subr.bf16.mxu1 %v3725_v60  ;;  %v4708_v60 = vpack.c.bf16 %v696_v51, %v695_v50  ;;  %v768_v61 = vpack.c.bf16 %v758_v57, %v757_v55  ;;  %v3729_v51 = vld [vmem:[%s5480_s18 + $0x108] sm:$0xff]  }
  0xcb   : > { %903 = vrot.lane.b32.xlu0 %v4510_v62, %s3985_s3 }
  0xcd   : > { %3288 = vmatpush3.bf16.msra.mxu1 %v3726_v2  ;;  %v4714_v2 = vpack.c.bf16 %v698_v0, %v697_v63  ;;  %v3730_v63 = vld [vmem:[%s5480_s18 + $0x110] sm:$0xff]  }
  0xce   : > { %873 = vrot.lane.b32.xlu1 %v4598_v4, %s3985_s3  ;;  %3289 = vmatprep.subr.bf16.mxu1 %v3727_v5  ;;  %v588_v5 = vld [vmem:[#allocation2 + $0x2] sm:$0xff] }
  0xcf   : > { %853 = vrot.lane.b32.xlu0 %v4605_v7, %s3985_s3 }
  0xd1   : > { %3290 = vmatpush3.bf16.msra.mxu1 %v3728_v9  ;;  %v589_v9 = vld [vmem:[#allocation2 + $0xa] sm:$0xff] }
  0xd2   : > { %823 = vrot.lane.b32.xlu1 %v4615_v14, %s3985_s3  ;;  %v608_v10 = vpack.c.bf16 %v589_v9, %v588_v5 }
  0xd3   : > { %905 = vrot.lane.b32.xlu0 %v4545_v13, %s3985_s3 }
  0xd6   : > { %875 = vrot.lane.b32.xlu1 %v4635_v40, %s3985_s3 }
  0xd7   : > { %855 = vrot.lane.b32.xlu0 %v4642_v42, %s3985_s3 }
  0xda   : > { %825 = vrot.lane.b32.xlu1 %v4653_v54, %s3985_s3 }
  0xdb   : > { %907 = vrot.lane.b32.xlu0 %v4580_v56, %s3985_s3 }
  0xde   : > { %877 = vrot.lane.b32.xlu1 %v4665_v1, %s3985_s3 }
  0xdf   : > { %857 = vrot.lane.b32.xlu0 %v4672_v3, %s3985_s3 }
  0xe2   : > { %827 = vrot.lane.b32.xlu1 %v4679_v8, %s3985_s3 }
  0xe3   : > { %909 = vrot.lane.b32.xlu0 %v4615_v14, %s3985_s3 }
  0xe6   : > { %879 = vrot.lane.b32.xlu1 %v4688_v18, %s3985_s3 }
  0xe7   : > { %911 = vrot.lane.b32.xlu0 %v4653_v54, %s3985_s3 }
  0xea   : > { %881 = vrot.lane.b32.xlu1 %v4694_v33, %s3985_s3 }
  0xeb   : > { %913 = vrot.lane.b32.xlu0 %v4679_v8, %s3985_s3 }
  0xee   : > { %883 = vrot.lane.b32.xlu1 %v4700_v45, %s3985_s3 }
  0xef   : > { %915 = vrot.lane.b32.xlu0 %v4704_v49, %s3985_s3 }
  0xf2   : > { %885 = vrot.lane.b32.xlu1 %v4708_v60, %s3985_s3 }
  0xf3   : > { %917 = vrot.lane.b32.xlu0 %v768_v61, %s3985_s3 }
  0xf6   : > { %887 = vrot.lane.b32.xlu1 %v4714_v2, %s3985_s3 }
 0x119   : > { %v840_v32 = vpop.permute.xlu0 %839 }
 0x11a   : > { %v961_v34 = vsel %vm492_vm1, %v608_v10, %v840_v32 }
 0x11b   : > { %1436 = vmatprep.mubr.bf16.mxu0 %v961_v34 }
 0x11c   : > { %v842_v37 = vpop.permute.xlu1 %841 }
 0x11d   : > { %v810_v41 = vpop.permute.xlu0 %809  ;;  %v965_v50 = vsel %vm492_vm1, %v4523_v6, %v842_v37 }
 0x11e   : > { %v921_v55 = vsel %vm492_vm1, %v548_v36, %v810_v41 }
 0x11f   : > { %1437 = vmatmul.mubr.bf16.vlgmr.msra.gmra.mrb[0].mxu0 %v921_v55 }
 0x120   : > { %v812_v57 = vpop.permute.xlu1 %811  ;;  %3506 = vmatpush3.bf16.msra.mxu0 %v4631_v39  ;;  %1444 = vmatprep.mubr.bf16.mxu0 %v965_v50  ;;  %v3731_v39 = vld [vmem:[%s5480_s18 + $0x118] sm:$0xff]  }
 0x121   : > { %v844_v61 = vpop.permute.xlu0 %843  ;;  %3507 = vmatprep.subr.bf16.mxu0 %v3729_v51  ;;  %v925_v6 = vsel %vm492_vm1, %v4474_v35, %v812_v57 }
 0x122   : > { %v969_v9 = vsel %vm492_vm1, %v4560_v44, %v844_v61 }
 0x124   : > { %v814_v0 = vpop.permute.xlu1 %813  ;;  %3508 = vmatpush3.bf16.msra.mxu0 %v3729_v51 }
 0x125   : > { %v846_v5 = vpop.permute.xlu0 %845  ;;  %3509 = vmatprep.subr.bf16.mxu0 %v3730_v63  ;;  %v929_v35 = vsel %vm492_vm1, %v4483_v43, %v814_v0 }
 0x126   : > { %v973_v34 = vsel %vm492_vm1, %v4598_v4, %v846_v5 }
 0x127   : > { %1445 = vmatmul.mubr.bf16.gmra.mrb[4].mxu0 %v925_v6 }
 0x128   : > { %v816_v10 = vpop.permute.xlu1 %815  ;;  %1452 = vmatprep.mubr.bf16.mxu0 %v969_v9  ;;  %3510 = vmatpush3.bf16.msra.mxu0 %v3730_v63 }
 0x129   : > { %v848_v12 = vpop.permute.xlu0 %847  ;;  %3511 = vmatprep.subr.bf16.mxu0 %v3731_v39  ;;  %v933_v55 = vsel %vm492_vm1, %v4490_v47, %v816_v10 }
 0x12a   : > { %v977_v61 = vsel %vm492_vm1, %v4635_v40, %v848_v12 }
 0x12c   : > { %v818_v19 = vpop.permute.xlu1 %817  ;;  %3512 = vmatpush3.bf16.msra.mxu0 %v3731_v39 }
 0x12d   : > { %v900_v32 = vpop.permute.xlu0 %899  ;;  %v937_v5 = vsel %vm492_vm1, %v4498_v53, %v818_v19 }
 0x12e   : > { %v1041_v36 = vsel %vm492_vm1, %v4483_v43, %v900_v32 }
 0x12f   : > { %1453 = vmatmul.mubr.bf16.gmra.mrb[8].mxu0 %v929_v35  ;;  %1549 = vmatprep.mubr.bf16.mxu1 %v1041_v36 }
 0x130   : > { %v870_v37 = vpop.permute.xlu1 %869  ;;  %1460 = vmatprep.mubr.bf16.mxu0 %v973_v34 }
 0x131   : > { %v1001_v41 = vsel %vm492_vm1, %v4487_v46, %v870_v37  ;;  %v850_v50 = vpop.permute.xlu0 %849 }
 0x132   : > { %1550 = vmatmul.mubr.bf16.vlgmr.msra.gmra.mrb[0].mxu1 %v1001_v41  ;;  %v981_v39 = vsel %vm492_vm1, %v4665_v1, %v850_v50 }
 0x134   : > { %v820_v51 = vpop.permute.xlu1 %819 }
 0x135   : > { %v902_v57 = vpop.permute.xlu0 %901  ;;  %v941_v19 = vsel %vm492_vm1, %v4506_v59, %v820_v51 }
 0x136   : > { %v1045_v43 = vsel %vm492_vm1, %v4490_v47, %v902_v57 }
 0x137   : > { %1461 = vmatmul.mubr.bf16.gmra.mrb[12].mxu0 %v933_v55  ;;  %1557 = vmatprep.mubr.bf16.mxu1 %v1045_v43 }
 0x138   : > { %v872_v63 = vpop.permute.xlu1 %871  ;;  %1468 = vmatprep.mubr.bf16.mxu0 %v977_v61 }
 0x139   : > { %v1005_v46 = vsel %vm492_vm1, %v4494_v52, %v872_v63  ;;  %v852_v0 = vpop.permute.xlu0 %851 }
 0x13a   : > { %1558 = vmatmul.mubr.bf16.gmra.mrb[4].mxu1 %v1005_v46  ;;  %v985_v34 = vsel %vm492_vm1, %v4688_v18, %v852_v0 }
 0x13c   : > { %v822_v6 = vpop.permute.xlu1 %821 }
 0x13d   : > { %v904_v9 = vpop.permute.xlu0 %903  ;;  %v945_v50 = vsel %vm492_vm1, %v4529_v11, %v822_v6 }
 0x13e   : > { %v1049_v47 = vsel %vm492_vm1, %v4498_v53, %v904_v9 }
 0x13f   : > { %1469 = vmatmul.mubr.bf16.gmra.mrb[16].mxu0 %v937_v5  ;;  %1565 = vmatprep.mubr.bf16.mxu1 %v1049_v47 }
 0x140   : > { %v874_v10 = vpop.permute.xlu1 %873  ;;  %1476 = vmatprep.mubr.bf16.mxu0 %v981_v39 }
 0x141   : > { %v1009_v52 = vsel %vm492_vm1, %v4502_v58, %v874_v10  ;;  %v854_v12 = vpop.permute.xlu0 %853 }
 0x142   : > { %1566 = vmatmul.mubr.bf16.gmra.mrb[8].mxu1 %v1009_v52  ;;  %v989_v55 = vsel %vm492_vm1, %v4694_v33, %v854_v12 }
 0x144   : > { %v824_v35 = vpop.permute.xlu1 %823 }
 0x145   : > { %v906_v32 = vpop.permute.xlu0 %905  ;;  %v949_v63 = vsel %vm492_vm1, %v4567_v48, %v824_v35 }
 0x146   : > { %v1053_v53 = vsel %vm492_vm1, %v4506_v59, %v906_v32  ;;  %v727_v32 = vld [vmem:[#allocation2 + $0x108] sm:$0xff] }
 0x147   : > { %1477 = vmatmul.mubr.bf16.gmra.mrb[20].mxu0 %v941_v19  ;;  %1573 = vmatprep.mubr.bf16.mxu1 %v1053_v53 }
 0x148   : > { %v876_v36 = vpop.permute.xlu1 %875  ;;  %1484 = vmatprep.mubr.bf16.mxu0 %v985_v34  ;;  %v728_v34 = vld [vmem:[#allocation2 + $0x110] sm:$0xff] }
 0x149   : > { %v1013_v58 = vsel %vm492_vm1, %v4510_v62, %v876_v36  ;;  %v856_v37 = vpop.permute.xlu0 %855  ;;  %v738_v36 = vpack.c.bf16 %v728_v34, %v727_v32 }
 0x14a   : > { %1574 = vmatmul.mubr.bf16.gmra.mrb[12].mxu1 %v1013_v58  ;;  %v993_v0 = vsel %vm492_vm1, %v4700_v45, %v856_v37 }
 0x14c   : > { %v826_v41 = vpop.permute.xlu1 %825 }
 0x14d   : > { %v908_v51 = vpop.permute.xlu0 %907  ;;  %v953_v47 = vsel %vm492_vm1, %v4605_v7, %v826_v41 }
 0x14e   : > { %v1057_v59 = vsel %vm492_vm1, %v4529_v11, %v908_v51 }
 0x14f   : > { %1485 = vmatmul.mubr.bf16.gmra.mrb[24].mxu0 %v945_v50  ;;  %1581 = vmatprep.mubr.bf16.mxu1 %v1057_v59 }
 0x150   : > { %v878_v57 = vpop.permute.xlu1 %877  ;;  %1492 = vmatprep.mubr.bf16.mxu0 %v989_v55 }
 0x151   : > { %v1017_v62 = vsel %vm492_vm1, %v4545_v13, %v878_v57  ;;  %v858_v61 = vpop.permute.xlu0 %857 }
 0x152   : > { %1582 = vmatmul.mubr.bf16.gmra.mrb[16].mxu1 %v1017_v62 }
 0x154   : > { %v828_v43 = vpop.permute.xlu1 %827 }
 0x155   : > { %v910_v46 = vpop.permute.xlu0 %909  ;;  %v957_v35 = vsel %vm492_vm1, %v4642_v42, %v828_v43 }
 0x156   : > { %v1061_v11 = vsel %vm492_vm1, %v4567_v48, %v910_v46  ;;  %v997_v48 = vsel %vm492_vm1, %v4708_v60, %v858_v61 }
 0x157   : > { %1493 = vmatmul.mubr.bf16.gmra.mrb[28].mxu0 %v949_v63  ;;  %1589 = vmatprep.mubr.bf16.mxu1 %v1061_v11 }
 0x158   : > { %v880_v6 = vpop.permute.xlu1 %879  ;;  %1500 = vmatprep.mubr.bf16.mxu0 %v993_v0 }
 0x159   : > { %v1021_v13 = vsel %vm492_vm1, %v4580_v56, %v880_v6  ;;  %v912_v5 = vpop.permute.xlu0 %911 }
 0x15a   : > { %1590 = vmatmul.mubr.bf16.gmra.mrb[20].mxu1 %v1021_v13  ;;  %v1065_v9 = vsel %vm492_vm1, %v4605_v7, %v912_v5 }
 0x15b   : > { %1597 = vmatprep.mubr.bf16.mxu1 %v1065_v9 }
 0x15c   : > { %v882_v39 = vpop.permute.xlu1 %881 }
 0x15d   : > { %v914_v10 = vpop.permute.xlu0 %913  ;;  %v1025_v52 = vsel %vm492_vm1, %v4615_v14, %v882_v39 }
 0x15e   : > { %v1069_v56 = vsel %vm492_vm1, %v4642_v42, %v914_v10 }
 0x15f   : > { %1501 = vmatmul.mubr.bf16.gmra.mrb[32].mxu0 %v953_v47 }
 0x160   : > { %1508 = vmatprep.mubr.bf16.mxu0 %v997_v48  ;;  %v884_v12 = vpop.permute.xlu1 %883 }
 0x161   : > { %v916_v19 = vpop.permute.xlu0 %915  ;;  %v1029_v7 = vsel %vm492_vm1, %v4653_v54, %v884_v12 }
 0x162   : > { %1598 = vmatmul.mubr.bf16.gmra.mrb[24].mxu1 %v1025_v52  ;;  %v1073_v14 = vsel %vm492_vm1, %v4672_v3, %v916_v19 }
 0x163   : > { %1605 = vmatprep.mubr.bf16.mxu1 %v1069_v56 }
 0x164   : > { %v886_v53 = vpop.permute.xlu1 %885 }
 0x165   : > { %v918_v58 = vpop.permute.xlu0 %917  ;;  %v1033_v42 = vsel %vm492_vm1, %v4679_v8, %v886_v53 }
 0x167   : > { %1509 = vmatmul.mubr.bf16.gmra.mrb[36].mxu0 %v957_v35 }
 0x168   : > { %3513 = vmatprep.mubr.msk.bf16.mxu0 %vm492_vm1, %v4560_v44  ;;  %v1077_v44 = vsel %vm492_vm1, %v738_v36, %v918_v58  ;;  %v888_v54 = vpop.permute.xlu1 %887 }
 0x169   : > { %v1037_v3 = vsel %vm492_vm1, %v4704_v49, %v888_v54 }
 0x16a   : > { %1606 = vmatmul.mubr.bf16.gmra.mrb[28].mxu1 %v1029_v7 }
 0x16b   : > { %1613 = vmatprep.mubr.bf16.mxu1 %v1073_v14 }
 0x16f   : > { %3514 = vmatmul.mubr.msk.bf16.vlgmr.msra.gmra.mrb[40].mxu0 %vm492_vm1, %v4598_v4  ;;  %v787_v4 = vld [vmem:[#allocation2 + $0x10a] sm:$0xff] }
 0x170   : > { %3517 = vmatprep.mubr.msk.bf16.mxu0 %vm492_vm1, %v4635_v40  ;;  %v788_v40 = vld [vmem:[#allocation2 + $0x112] sm:$0xff] }
 0x172   : > { %1614 = vmatmul.mubr.bf16.gmra.mrb[32].mxu1 %v1033_v42 }
 0x173   : > { %1621 = vmatprep.mubr.bf16.mxu1 %v1077_v44 }
 0x177   : > { %3518 = vmatmul.mubr.msk.bf16.gmra.mrb[44].mxu0 %vm492_vm1, %v4665_v1  ;;  %v798_v1 = vpack.c.bf16 %v788_v40, %v787_v4 }
 0x178   : > { %3521 = vmatprep.mubr.msk.bf16.mxu0 %vm492_vm1, %v4688_v18 }
 0x17a   : > { %1622 = vmatmul.mubr.bf16.gmra.mrb[36].mxu1 %v1037_v3 }
 0x17f   : > { %3522 = vmatmul.mubr.msk.bf16.gmra.mrb[48].mxu0 %vm492_vm1, %v4694_v33 }
 0x180   : > { %3525 = vmatprep.mubr.msk.bf16.mxu0 %vm492_vm1, %v4700_v45 }
 0x187   : > { %3526 = vmatmul.mubr.msk.bf16.gmra.mrb[52].mxu0 %vm492_vm1, %v4708_v60 }
 0x188   : > { %3529 = vmatprep.mubr.msk.bf16.mxu0 %vm492_vm1, %v4714_v2  ;;  %v4828_v2 = vld [vmem:[%s5482_s30] ss:$0 sm:$0xff] }
 0x18f   : > { %3530 = vmatmul.mubr.msk.bf16.gmra.mrb[56].mxu0 %vm492_vm1, %v798_v1 }
 0x1f2   : > { %v3215_v8 = vpop.f32.mrb[0].mxu0 }
 0x1f3   : > { %v3216_v18 = vpop.f32.mrb[1].mxu0 }
 0x1f4   : > { %v3217_v49 = vadd.f32 %v3216_v18, %v3215_v8  ;;  %v3218_v37 = vpop.f32.mrb[2].mxu0 }
 0x1f5   : > { %v3219_v41 = vpop.f32.mrb[3].mxu0 }
 0x1f6   : > { %v3220_v33 = vadd.f32 %v3219_v41, %v3218_v37  ;;  %v1439_v6 = vadd.f32 %v3217_v49, %v4828_v2 }
 0x1f8   : > { %v1442_v39 = vadd.f32 %v3220_v33, %v4828_v2 }
 0x1fa   : > { %v3221_v50 = vpop.f32.mrb[4].mxu0 }
 0x1fb   : > { %v3222_v51 = vpop.f32.mrb[5].mxu0 }
 0x1fc   : > { %v3223_v45 = vadd.f32 %v3222_v51, %v3221_v50  ;;  %v3224_v55 = vpop.f32.mrb[6].mxu0 }
 0x1fd   : > { %v3225_v59 = vpop.f32.mrb[7].mxu0 }
 0x1fe   : > { %v3226_v60 = vadd.f32 %v3225_v59, %v3224_v55  ;;  %v1447_v34 = vadd.f32 %v3223_v45, %v4828_v2 }
 0x200   : > { %v1450_v42 = vadd.f32 %v3226_v60, %v4828_v2 }
 0x202   : > { %v3227_v57 = vpop.f32.mrb[8].mxu0 }
 0x203   : > { %v3228_v62 = vpop.f32.mrb[9].mxu0 }
 0x204   : > { %v3229_v61 = vadd.f32 %v3228_v62, %v3227_v57  ;;  %v3230_v43 = vpop.f32.mrb[10].mxu0 }
 0x205   : > { %v3291_v63 = vpop.f32.mrb[0].mxu1  ;;  %v3231_v46 = vpop.f32.mrb[11].mxu0 }
 0x206   : > { %v3292_v0 = vpop.f32.mrb[1].mxu1  ;;  %v3232_v11 = vadd.f32 %v3231_v46, %v3230_v43  ;;  %v1455_v33 = vadd.f32 %v3229_v61, %v4828_v2 }
 0x207   : > { %v3293_v13 = vadd.f32 %v3292_v0, %v3291_v63  ;;  %v3294_v5 = vpop.f32.mrb[2].mxu1 }
 0x208   : > { %v3295_v9 = vpop.f32.mrb[3].mxu1  ;;  %v1458_v55 = vadd.f32 %v3232_v11, %v4828_v2 }
 0x209   : > { %v3296_v47 = vadd.f32 %v3295_v9, %v3294_v5  ;;  %v4832_v10 = vadd.f32 %v3293_v13, %v1439_v6 }
 0x20a   : > { %v3233_v48 = vpop.f32.mrb[12].mxu0 }
 0x20b   : > { %v3234_v52 = vpop.f32.mrb[13].mxu0  ;;  %v4834_v56 = vadd.f32 %v3296_v47, %v1442_v39 }
 0x20c   : > { %v3235_v12 = vadd.f32 %v3234_v52, %v3233_v48  ;;  %v3236_v35 = vpop.f32.mrb[14].mxu0 }
 0x20d   : > { %v3297_v19 = vpop.f32.mrb[4].mxu1  ;;  %v3237_v7 = vpop.f32.mrb[15].mxu0 }
 0x20e   : > { %v3298_v14 = vpop.f32.mrb[5].mxu1  ;;  %v3238_v32 = vadd.f32 %v3237_v7, %v3236_v35  ;;  %v1463_v61 = vadd.f32 %v3235_v12, %v4828_v2 }
 0x20f   : > { %v3299_v53 = vadd.f32 %v3298_v14, %v3297_v19  ;;  %v3300_v36 = vpop.f32.mrb[6].mxu1 }
 0x210   : > { %v3301_v58 = vpop.f32.mrb[7].mxu1  ;;  %v1466_v11 = vadd.f32 %v3238_v32, %v4828_v2 }
 0x211   : > { %v3302_v44 = vadd.f32 %v3301_v58, %v3300_v36  ;;  %v4838_v54 = vadd.f32 %v3299_v53, %v1447_v34 }
 0x212   : > { %v3239_v3 = vpop.f32.mrb[16].mxu0 }
 0x213   : > { %v3240_v4 = vpop.f32.mrb[17].mxu0  ;;  %v4840_v40 = vadd.f32 %v3302_v44, %v1450_v42 }
 0x214   : > { %v3241_v1 = vadd.f32 %v3240_v4, %v3239_v3  ;;  %v3242_v8 = vpop.f32.mrb[18].mxu0 }
 0x215   : > { %v3303_v18 = vpop.f32.mrb[8].mxu1  ;;  %v3243_v49 = vpop.f32.mrb[19].mxu0 }
 0x216   : > { %v3304_v37 = vpop.f32.mrb[9].mxu1  ;;  %v3244_v41 = vadd.f32 %v3243_v49, %v3242_v8  ;;  %v1471_v12 = vadd.f32 %v3241_v1, %v4828_v2 }
 0x217   : > { %v3305_v50 = vadd.f32 %v3304_v37, %v3303_v18  ;;  %v3306_v51 = vpop.f32.mrb[10].mxu1 }
 0x218   : > { %v3307_v45 = vpop.f32.mrb[11].mxu1  ;;  %v1474_v32 = vadd.f32 %v3244_v41, %v4828_v2 }
 0x219   : > { %v3308_v59 = vadd.f32 %v3307_v45, %v3306_v51  ;;  %v4844_v60 = vadd.f32 %v3305_v50, %v1455_v33 }
 0x21a   : > { %v3245_v57 = vpop.f32.mrb[20].mxu0 }
 0x21b   : > { %v3246_v62 = vpop.f32.mrb[21].mxu0  ;;  %v4846_v43 = vadd.f32 %v3308_v59, %v1458_v55 }
 0x21c   : > { %v3247_v63 = vadd.f32 %v3246_v62, %v3245_v57  ;;  %v3248_v46 = vpop.f32.mrb[22].mxu0 }
 0x21d   : > { %v3309_v0 = vpop.f32.mrb[12].mxu1  ;;  %v3249_v6 = vpop.f32.mrb[23].mxu0 }
 0x21e   : > { %v3310_v13 = vpop.f32.mrb[13].mxu1  ;;  %v3250_v5 = vadd.f32 %v3249_v6, %v3248_v46  ;;  %v1479_v1 = vadd.f32 %v3247_v63, %v4828_v2 }
 0x21f   : > { %v3311_v9 = vadd.f32 %v3310_v13, %v3309_v0  ;;  %v3312_v39 = vpop.f32.mrb[14].mxu1 }
 0x220   : > { %v3313_v47 = vpop.f32.mrb[15].mxu1  ;;  %v1482_v41 = vadd.f32 %v3250_v5, %v4828_v2 }
 0x221   : > { %v3314_v48 = vadd.f32 %v3313_v47, %v3312_v39  ;;  %v4850_v52 = vadd.f32 %v3311_v9, %v1463_v61 }
 0x222   : > { %v3251_v35 = vpop.f32.mrb[24].mxu0 }
 0x223   : > { %v3252_v19 = vpop.f32.mrb[25].mxu0  ;;  %v4852_v7 = vadd.f32 %v3314_v48, %v1466_v11 }
 0x224   : > { %v3253_v14 = vadd.f32 %v3252_v19, %v3251_v35  ;;  %v3254_v34 = vpop.f32.mrb[26].mxu0 }
 0x225   : > { %v3315_v53 = vpop.f32.mrb[16].mxu1  ;;  %v3255_v36 = vpop.f32.mrb[27].mxu0 }
 0x226   : > { %v3316_v58 = vpop.f32.mrb[17].mxu1  ;;  %v3256_v42 = vadd.f32 %v3255_v36, %v3254_v34  ;;  %v1487_v63 = vadd.f32 %v3253_v14, %v4828_v2 }
 0x227   : > { %v3317_v44 = vadd.f32 %v3316_v58, %v3315_v53  ;;  %v3318_v3 = vpop.f32.mrb[18].mxu1 }
 0x228   : > { %v3319_v4 = vpop.f32.mrb[19].mxu1  ;;  %v1490_v5 = vadd.f32 %v3256_v42, %v4828_v2 }
 0x229   : > { %v3320_v8 = vadd.f32 %v3319_v4, %v3318_v3  ;;  %v4856_v18 = vadd.f32 %v3317_v44, %v1471_v12 }
 0x22a   : > { %v3257_v49 = vpop.f32.mrb[28].mxu0 }
 0x22b   : > { %v3258_v37 = vpop.f32.mrb[29].mxu0  ;;  %v4858_v33 = vadd.f32 %v3320_v8, %v1474_v32 }
 0x22c   : > { %v3259_v50 = vadd.f32 %v3258_v37, %v3257_v49  ;;  %v3260_v51 = vpop.f32.mrb[30].mxu0 }
 0x22d   : > { %v3321_v45 = vpop.f32.mrb[20].mxu1  ;;  %v3261_v55 = vpop.f32.mrb[31].mxu0 }
 0x22e   : > { %v3322_v59 = vpop.f32.mrb[21].mxu1  ;;  %v3262_v57 = vadd.f32 %v3261_v55, %v3260_v51  ;;  %v1495_v14 = vadd.f32 %v3259_v50, %v4828_v2 }
 0x22f   : > { %v3323_v62 = vadd.f32 %v3322_v59, %v3321_v45  ;;  %v3324_v46 = vpop.f32.mrb[22].mxu1 }
 0x230   : > { %v3325_v0 = vpop.f32.mrb[23].mxu1  ;;  %v1498_v42 = vadd.f32 %v3262_v57, %v4828_v2 }
 0x231   : > { %v3326_v6 = vadd.f32 %v3325_v0, %v3324_v46  ;;  %v4862_v13 = vadd.f32 %v3323_v62, %v1479_v1 }
 0x232   : > { %v3263_v61 = vpop.f32.mrb[32].mxu0 }
 0x233   : > { %v3264_v9 = vpop.f32.mrb[33].mxu0  ;;  %v4864_v39 = vadd.f32 %v3326_v6, %v1482_v41 }
 0x234   : > { %v3265_v47 = vadd.f32 %v3264_v9, %v3263_v61  ;;  %v3266_v11 = vpop.f32.mrb[34].mxu0 }
 0x235   : > { %v3327_v48 = vpop.f32.mrb[24].mxu1  ;;  %v3267_v35 = vpop.f32.mrb[35].mxu0 }
 0x236   : > { %v3328_v19 = vpop.f32.mrb[25].mxu1  ;;  %v3268_v34 = vadd.f32 %v3267_v35, %v3266_v11 }
 0x237   : > { %v3329_v53 = vadd.f32 %v3328_v19, %v3327_v48  ;;  %v3330_v36 = vpop.f32.mrb[26].mxu1 }
 0x238   : > { %v3331_v58 = vpop.f32.mrb[27].mxu1 }
 0x239   : > { %v3332_v12 = vadd.f32 %v3331_v58, %v3330_v36  ;;  %v4868_v44 = vadd.f32 %v3329_v53, %v1487_v63  ;;  %v1503_v58 = vadd.f32 %v3265_v47, %v4828_v2 }
 0x23a   : > { %v3269_v3 = vpop.f32.mrb[36].mxu0 }
 0x23b   : > { %v3270_v4 = vpop.f32.mrb[37].mxu0  ;;  %v4870_v32 = vadd.f32 %v3332_v12, %v1490_v5 }
 0x23c   : > { %v3271_v8 = vadd.f32 %v3270_v4, %v3269_v3  ;;  %v3272_v49 = vpop.f32.mrb[38].mxu0  ;;  %v1506_v4 = vadd.f32 %v3268_v34, %v4828_v2 }
 0x23d   : > { %v3333_v37 = vpop.f32.mrb[28].mxu1  ;;  %v3273_v51 = vpop.f32.mrb[39].mxu0 }
 0x23e   : > { %v3334_v45 = vpop.f32.mrb[29].mxu1  ;;  %v3274_v55 = vadd.f32 %v3273_v51, %v3272_v49 }
 0x23f   : > { %v3335_v59 = vadd.f32 %v3334_v45, %v3333_v37  ;;  %v3336_v1 = vpop.f32.mrb[30].mxu1 }
 0x240   : > { %v3337_v62 = vpop.f32.mrb[31].mxu1 }
 0x241   : > { %v3338_v46 = vadd.f32 %v3337_v62, %v3336_v1  ;;  %v4874_v0 = vadd.f32 %v3335_v59, %v1495_v14 }
 0x242   : > { %v3515_v41 = vpop.f32.mrb[40].mxu0 }
 0x243   : > { %v1673_v6 = vadd.f32 %v3515_v41, %v4838_v54  ;;  %v1664_v61 = vpop.f32.mrb[41].mxu0  ;;  %v4877_v9 = vadd.f32 %v3338_v46, %v1498_v42 }
 0x244   : > { %v1665_v11 = vadd.f32 %v1664_v61, %v4832_v10  ;;  %v3516_v48 = vpop.f32.mrb[42].mxu0 }
 0x245   : > { %v1745_v35 = vmax.f32 %v1673_v6, 0.0  ;;  %v3339_v19 = vpop.f32.mrb[32].mxu1  ;;  %v1676_v50 = vadd.f32 %v3516_v48, %v4840_v40  ;;  %v1667_v63 = vpop.f32.mrb[43].mxu0  ;;  %v1511_v6 = vadd.f32 %v3271_v8, %v4828_v2 }
 0x246   : > { %v1743_v53 = vmax.f32 %v1665_v11, 0.0  ;;  %v3340_v36 = vpop.f32.mrb[33].mxu1  ;;  %v1668_v57 = vadd.f32 %v1667_v63, %v4834_v56 }
 0x247   : > { %1785 = vst.msk [vmem:[#allocation3 + $0x19] sm:$0xff] %vm492_vm1, %v1745_v35  ;;  %v3341_v54 = vadd.f32 %v3340_v36, %v3339_v19  ;;  %v1746_v5 = vmax.f32 %v1676_v50, 0.0  ;;  %v3342_v12 = vpop.f32.mrb[34].mxu1  ;;  %v1514_v35 = vadd.f32 %v3274_v55, %v4828_v2 }
 0x248   : > { %1783 = vst.msk [vmem:[#allocation3 + $0x1] sm:$0xff] %vm492_vm1, %v1743_v53  ;;  %v1744_v10 = vmax.f32 %v1668_v57, 0.0  ;;  %v3343_v3 = vpop.f32.mrb[35].mxu1 }
 0x249   : > { %1786 = vst.msk [vmem:[#allocation3 + $0x21] sm:$0xff] %vm492_vm1, %v1746_v5  ;;  %v3344_v40 = vadd.f32 %v3343_v3, %v3342_v12  ;;  %v4887_v49 = vadd.f32 %v3341_v54, %v1503_v58 }
 0x24a   : > { %1784 = vst.msk [vmem:[#allocation3 + $0x9] sm:$0xff] %vm492_vm1, %v1744_v10  ;;  %v3519_v56 = vpop.f32.mrb[44].mxu0 }
 0x24b   : > { %v1689_v47 = vadd.f32 %v3519_v56, %v4850_v52  ;;  %v1680_v37 = vpop.f32.mrb[45].mxu0  ;;  %v4891_v51 = vadd.f32 %v3344_v40, %v1506_v4 }
 0x24c   : > { %v1681_v45 = vadd.f32 %v1680_v37, %v4844_v60  ;;  %v3520_v14 = vpop.f32.mrb[46].mxu0 }
 0x24d   : > { %v1749_v59 = vmax.f32 %v1689_v47, 0.0  ;;  %v3345_v1 = vpop.f32.mrb[36].mxu1  ;;  %v1692_v34 = vadd.f32 %v3520_v14, %v4852_v7  ;;  %v1683_v62 = vpop.f32.mrb[47].mxu0 }
 0x24e   : > { %v1747_v42 = vmax.f32 %v1681_v45, 0.0  ;;  %v3346_v46 = vpop.f32.mrb[37].mxu1  ;;  %v1684_v41 = vadd.f32 %v1683_v62, %v4846_v43 }
 0x24f   : > { %1789 = vst.msk [vmem:[#allocation3 + $0x49] sm:$0xff] %vm492_vm1, %v1749_v59  ;;  %v3347_v52 = vadd.f32 %v3346_v46, %v3345_v1  ;;  %v1750_v61 = vmax.f32 %v1692_v34, 0.0  ;;  %v3348_v11 = vpop.f32.mrb[38].mxu1 }
 0x250   : > { %1787 = vst.msk [vmem:[#allocation3 + $0x31] sm:$0xff] %vm492_vm1, %v1747_v42  ;;  %v1748_v60 = vmax.f32 %v1684_v41, 0.0  ;;  %v3349_v48 = vpop.f32.mrb[39].mxu1 }
 0x251   : > { %1790 = vst.msk [vmem:[#allocation3 + $0x51] sm:$0xff] %vm492_vm1, %v1750_v61  ;;  %v3350_v7 = vadd.f32 %v3349_v48, %v3348_v11  ;;  %v1624_v19 = vadd.f32 %v3347_v52, %v1511_v6 }
 0x252   : > { %1788 = vst.msk [vmem:[#allocation3 + $0x39] sm:$0xff] %vm492_vm1, %v1748_v60  ;;  %v3523_v43 = vpop.f32.mrb[48].mxu0 }
 0x253   : > { %v1705_v8 = vadd.f32 %v3523_v43, %v4862_v13  ;;  %v1696_v50 = vpop.f32.mrb[49].mxu0  ;;  %v1627_v63 = vadd.f32 %v3350_v7, %v1514_v35 }
 0x254   : > { %v1697_v53 = vadd.f32 %v1696_v50, %v4856_v18  ;;  %v3524_v36 = vpop.f32.mrb[50].mxu0 }
 0x255   : > { %v1753_v57 = vmax.f32 %v1705_v8, 0.0  ;;  %v1708_v58 = vadd.f32 %v3524_v36, %v4864_v39  ;;  %v1699_v54 = vpop.f32.mrb[51].mxu0 }
 0x256   : > { %v1751_v5 = vmax.f32 %v1697_v53, 0.0  ;;  %v1700_v2 = vadd.f32 %v1699_v54, %v4858_v33 }
 0x257   : > { %1793 = vst.msk [vmem:[#allocation3 + $0x79] sm:$0xff] %vm492_vm1, %v1753_v57  ;;  %v1754_v55 = vmax.f32 %v1708_v58, 0.0 }
 0x258   : > { %1791 = vst.msk [vmem:[#allocation3 + $0x61] sm:$0xff] %vm492_vm1, %v1751_v5  ;;  %v1752_v12 = vmax.f32 %v1700_v2, 0.0 }
 0x259   : > { %1794 = vst.msk [vmem:[#allocation3 + $0x81] sm:$0xff] %vm492_vm1, %v1754_v55 }
 0x25a   : > { %1792 = vst.msk [vmem:[#allocation3 + $0x69] sm:$0xff] %vm492_vm1, %v1752_v12  ;;  %v3527_v13 = vpop.f32.mrb[52].mxu0 }
 0x25b   : > { %v1721_v18 = vadd.f32 %v3527_v13, %v4874_v0  ;;  %v1712_v10 = vpop.f32.mrb[53].mxu0 }
 0x25c   : > { %v1713_v39 = vadd.f32 %v1712_v10, %v4868_v44  ;;  %v3528_v3 = vpop.f32.mrb[54].mxu0 }
 0x25d   : > { %v1757_v4 = vmax.f32 %v1721_v18, 0.0  ;;  %v1724_v33 = vadd.f32 %v3528_v3, %v4877_v9  ;;  %v1715_v40 = vpop.f32.mrb[55].mxu0 }
 0x25e   : > { %v1755_v56 = vmax.f32 %v1713_v39, 0.0  ;;  %v1716_v47 = vadd.f32 %v1715_v40, %v4870_v32 }
 0x25f   : > { %1797 = vst.msk [vmem:[#allocation3 + $0xa9] sm:$0xff] %vm492_vm1, %v1757_v4  ;;  %v1758_v37 = vmax.f32 %v1724_v33, 0.0 }
 0x260   : > { %1795 = vst.msk [vmem:[#allocation3 + $0x91] sm:$0xff] %vm492_vm1, %v1755_v56  ;;  %v1756_v45 = vmax.f32 %v1716_v47, 0.0 }
 0x261   : > { %1798 = vst.msk [vmem:[#allocation3 + $0xb1] sm:$0xff] %vm492_vm1, %v1758_v37 }
 0x262   : > { %1796 = vst.msk [vmem:[#allocation3 + $0x99] sm:$0xff] %vm492_vm1, %v1756_v45  ;;  %v3531_v0 = vpop.f32.mrb[56].mxu0 }
 0x263   : > { %v1737_v44 = vadd.f32 %v3531_v0, %v1624_v19  ;;  %v1728_v14 = vpop.f32.mrb[57].mxu0 }
 0x264   : > { %v1729_v9 = vadd.f32 %v1728_v14, %v4887_v49  ;;  %v3532_v59 = vpop.f32.mrb[58].mxu0  ;;  %1806 = sbr.rel (%p3136_p9) target bundleno = 619 (0x26b), region = 60  ;;  %v3986_v49 = vmov (!%p3136_p9), 0.0  }
 0x265   : > { %v1761_v1 = vmax.f32 %v1737_v44, 0.0  ;;  %v1740_v34 = vadd.f32 %v3532_v59, %v1627_v63  ;;  %v1731_v32 = vpop.f32.mrb[59].mxu0  ;;  %1807 = vst.msk [vmem:[#allocation3] sm:$0xff] (!%p3136_p9), %vm492_vm1, %v3986_v49  ;;  %1808 = vst.msk [vmem:[#allocation3 + $0x8] sm:$0xff] (!%p3136_p9), %vm492_vm1, %v3986_v49 }
 0x266   : > { %v1759_v62 = vmax.f32 %v1729_v9, 0.0  ;;  %v1732_v42 = vadd.f32 %v1731_v32, %v4891_v51  ;;  %1810 = vst.msk [vmem:[#allocation3 + $0x10] sm:$0x3] (!%p3136_p9), %vm1809_vm2, %v3986_v49 }
 0x267   : > { %1801 = vst.msk [vmem:[#allocation3 + $0xd9] sm:$0xff] %vm492_vm1, %v1761_v1  ;;  %v1762_v46 = vmax.f32 %v1740_v34, 0.0 }
 0x268   : > { %1799 = vst.msk [vmem:[#allocation3 + $0xc1] sm:$0xff] %vm492_vm1, %v1759_v62  ;;  %v1760_v41 = vmax.f32 %v1732_v42, 0.0 }
 0x269   : > { %1802 = vst.msk [vmem:[#allocation3 + $0xe1] sm:$0xff] %vm492_vm1, %v1762_v46 }
 0x26a   : > { %1800 = vst.msk [vmem:[#allocation3 + $0xc9] sm:$0xff] %vm492_vm1, %v1760_v41 }
 0x26b PF: > { %p3137_p11 = scmp.ne.s32.totalorder %s3962_s10, 1 }
 0x26c   : > { %vm1818_vm3 = vcmask (!%p3137_p11), 517120   ;;  %v3987_v51 = vmov (!%p3137_p11), 0.0  }
 0x26d   : > { %1814 = sbr.rel (%p3137_p11) target bundleno = 628 (0x274), region = 64  ;;  %1816 = vst.msk [vmem:[#allocation3 + $0xd8] sm:$0xff] (!%p3137_p11), %vm492_vm1, %v3987_v51  ;;  %1817 = vst.msk [vmem:[#allocation3 + $0xe0] sm:$0xff] (!%p3137_p11), %vm492_vm1, %v3987_v51 }
 0x26e   : > { %1819 = vst.msk [vmem:[#allocation3 + $0xe8] sm:$0x3] (!%p3137_p11), %vm1818_vm3, %v3987_v51 }
 0x274 PF: > { %v1893_v6 = vld [vmem:[#allocation3 + $0x18] sm:$0xff]  ;;  %v1894_v52 = vld [vmem:[#allocation3 + $0x20] sm:$0xff]  ;;  %v1895_v61 = vld [vmem:[#allocation3 + $0x30] sm:$0xff]  ;;  %s5483_s17 = sld [smem:[#allocation24_spill]]  ;;  %s5484_s7 = sld [smem:[#allocation25_spill]] }
 0x275   : > { %v4933_v11 = vpack.c.bf16 %v1894_v52, %v1893_v6  ;;  %v1896_v60 = vld [vmem:[#allocation3 + $0x38] sm:$0xff]  ;;  %v1844_v48 = vld [vmem:[#allocation3 + $0x1] sm:$0xff]  ;;  %v1845_v35 = vld [vmem:[#allocation3 + $0x9] sm:$0xff]  ;;  %s5485_s24 = sld [smem:[#allocation15_spill]]  ;;  %s3198_s1 = sshll.u32 %s3962_s10, 4 }
 0x276   : > { %v4935_v7 = vpack.c.bf16 %v1896_v60, %v1895_v61  ;;  %v1846_v19 = vld [vmem:[#allocation3 + $0x19] sm:$0xff]  ;;  %v1847_v43 = vld [vmem:[#allocation3 + $0x21] sm:$0xff]  ;;  %v1860_v8 = vpack.c.bf16 %v1845_v35, %v1844_v48  ;;  %v1898_v53 = vld [vmem:[#allocation3 + $0x50] sm:$0xff]  ;;  %s2921_s21 = sshll.u32 %s4925_s22, 4  ;;  %s5344_s0 = scalar_lea.sflag [#allocation6], %s410_s19  ;;  %s5333_s21 = int_to_ptr.vmem [resolvable:$true] %s2921_s21 }
 0x277   : > { %2070 = vrot.lane.b32.xlu0 %v4933_v11, %s3985_s3  ;;  %v4941_v50 = vpack.c.bf16 %v1847_v43, %v1846_v19  ;;  %v1897_v63 = vld [vmem:[#allocation3 + $0x48] sm:$0xff]  ;;  %v1848_v36 = vld [vmem:[#allocation3 + $0x31] sm:$0xff]  ;;  %v1849_v57 = vld [vmem:[#allocation3 + $0x39] sm:$0xff]  ;;  %s3828_s27 = scalar_lea.vmem %s5333_s21, 2048  ;;  %p5487_p3 = scmp.ne.s32.totalorder %s5462_s16, 0 }
 0x278   : > { %2072 = vrot.lane.b32.xlu1 %v4935_v7, %s3985_s3  ;;  %v4944_v58 = vpack.c.bf16 %v1898_v53, %v1897_v63  ;;  %v4948_v54 = vpack.c.bf16 %v1849_v57, %v1848_v36  ;;  %v1899_v5 = vld [vmem:[#allocation3 + $0x60] sm:$0xff]  ;;  %v1900_v2 = vld [vmem:[#allocation3 + $0x68] sm:$0xff]  ;;  %v1851_v12 = vld [vmem:[#allocation3 + $0x51] sm:$0xff]  ;;  %p3829_p8 = scmp.ne.s32.totalorder %s5333_s21, %s3828_s27  ;;  %s3988_s11 = smov [#allocation9]  }
 0x279   : > { %v1850_v55 = vld [vmem:[#allocation3 + $0x49] sm:$0xff]  ;;  %v4952_v13 = vpack.c.bf16 %v1900_v2, %v1899_v5  ;;  %v1941_v10 = vld [vmem:[#allocation3 + $0x1a] sm:$0xff]  ;;  %v1943_v45 = vld [vmem:[#allocation3 + $0x32] sm:$0xff]  ;;  %s3832_s5 = sshll.u32 %s3988_s11, 4  ;;  %s3833_s5 = int_to_ptr.vmem [resolvable:$false] %s3832_s5 }
 0x27a   : > { %v4956_v18 = vpack.c.bf16 %v1851_v12, %v1850_v55  ;;  %v1942_v39 = vld [vmem:[#allocation3 + $0x22] sm:$0xff]  ;;  %v1901_v4 = vld [vmem:[#allocation3 + $0x78] sm:$0xff]  ;;  %v1903_v1 = vld [vmem:[#allocation3 + $0x90] sm:$0xff]  ;;  %p3830_p10 = pnand %p3829_p8, %p5487_p3  ;;  %p3835_p7 = scmp.lt.s32.totalorder %s5333_s21, %s3833_s5 }
 0x27b   : > { %2046 = vrot.lane.b32.xlu0 %v1860_v8, %s3985_s3  ;;  %v4962_v3 = vpack.c.bf16 %v1942_v39, %v1941_v10  ;;  %v1902_v33 = vld [vmem:[#allocation3 + $0x80] sm:$0xff]  ;;  %v1853_v56 = vld [vmem:[#allocation3 + $0x69] sm:$0xff]  ;;  %v1904_v34 = vld [vmem:[#allocation3 + $0x98] sm:$0xff]  ;;  %s3186_s20 = sshll.u32 %s5485_s24, 5 }
 0x27c   : > { %2048 = vrot.lane.b32.xlu1 %v4941_v50, %s3985_s3  ;;  %v1852_v40 = vld [vmem:[#allocation3 + $0x61] sm:$0xff]  ;;  %v4969_v37 = vpack.c.bf16 %v1902_v33, %v1901_v4  ;;  %v3736_v32 = vld [vmem:[%s5483_s17 + $0x50] sm:$0xff]   ;;  %v1854_v62 = vld [vmem:[#allocation3 + $0x79] sm:$0xff]  ;;  %v5004_v6 = vpack.c.bf16 %v1904_v34, %v1903_v1  ;;  %s2918_s30 = sadd.s32 %s3198_s1, %s3186_s20  ;;  %p3831_p6 = pneg %p3830_p10 }
 0x27d   : > { %v3732_v47 = vld [vmem:[%s5483_s17 + $0x40] sm:$0xff]   ;;  %v4976_v14 = vpack.c.bf16 %v1853_v56, %v1852_v40  ;;  %v3734_v9 = vld [vmem:[%s5483_s17 + $0x48] sm:$0xff]   ;;  %v3737_v41 = vld [vmem:[%s5483_s17 + $0x10] sm:$0xff]   ;;  %s3187_s10 = sshll.u32 %s2918_s30, 7 }
 0x27e   : > { %v1944_v0 = vld [vmem:[#allocation3 + $0x3a] sm:$0xff]  ;;  %3365 = vmatprep.subr.bf16.mxu1 %v3732_v47  ;;  %v3735_v59 = vld [vmem:[%s5483_s17 + $0x8] sm:$0xff]   ;;  %v1946_v61 = vld [vmem:[#allocation3 + $0x52] sm:$0xff] }
 0x27f   : > { %2074 = vrot.lane.b32.xlu0 %v4944_v58, %s3985_s3  ;;  %v3733_v44 = vld [vmem:[%s5483_s17] sm:$0xff]   ;;  %v4991_v46 = vpack.c.bf16 %v1944_v0, %v1943_v45  ;;  %v3738_v49 = vld [vmem:[%s5483_s17 + $0x58] sm:$0xff]   ;;  %v1945_v52 = vld [vmem:[#allocation3 + $0x4a] sm:$0xff] }
 0x280   : > { %2050 = vrot.lane.b32.xlu1 %v4948_v54, %s3985_s3  ;;  %3366 = vmatpush3.bf16.msra.mxu1 %v3733_v44  ;;  %v1855_v42 = vld [vmem:[#allocation3 + $0x81] sm:$0xff]  ;;  %v3739_v35 = vld [vmem:[%s5483_s17 + $0x18] sm:$0xff]   ;;  %v1906_v8 = vld [vmem:[#allocation3 + $0xb0] sm:$0xff]  ;;  %v5029_v5 = vpack.c.bf16 %v1946_v61, %v1945_v52 }
 0x281   : > { %3367 = vmatprep.subr.bf16.mxu1 %v3734_v9  ;;  %v3740_v51 = vld [vmem:[%s5483_s17 + $0xc0] sm:$0xff]   ;;  %v5011_v48 = vpack.c.bf16 %v1855_v42, %v1854_v62  ;;  %v1905_v43 = vld [vmem:[#allocation3 + $0xa8] sm:$0xff]  ;;  %v1856_v53 = vld [vmem:[#allocation3 + $0x91] sm:$0xff] }
 0x282   : > { %v3741_v60 = vld [vmem:[%s5483_s17 + $0x80] sm:$0xff]   ;;  %3429 = vmatprep.subr.bf16.mxu0 %v3740_v51  ;;  %v3744_v63 = vld [vmem:[%s5483_s17 + $0xc8] sm:$0xff]   ;;  %v3748_v12 = vld [vmem:[%s5483_s17 + $0xd0] sm:$0xff]   ;;  %v5042_v10 = vpack.c.bf16 %v1906_v8, %v1905_v43 }
 0x283   : > { %2076 = vrot.lane.b32.xlu0 %v4952_v13, %s3985_s3  ;;  %3430 = vmatpush3.bf16.msra.mxu0 %v3741_v60  ;;  %v3742_v19 = vld [vmem:[%s5483_s17 + $0x60] sm:$0xff]   ;;  %v3745_v57 = vld [vmem:[%s5483_s17 + $0x88] sm:$0xff]   ;;  %v3749_v33 = vld [vmem:[%s5483_s17 + $0x90] sm:$0xff]  }
 0x284   : > { %2052 = vrot.lane.b32.xlu1 %v4956_v18, %s3985_s3  ;;  %3368 = vmatpush3.bf16.msra.mxu1 %v3735_v59  ;;  %v1857_v36 = vld [vmem:[#allocation3 + $0x99] sm:$0xff]  ;;  %v3746_v55 = vld [vmem:[%s5483_s17 + $0x68] sm:$0xff]   ;;  %v3750_v47 = vld [vmem:[%s5483_s17 + $0x70] sm:$0xff]  }
 0x285   : > { %3369 = vmatprep.subr.bf16.mxu1 %v3736_v32  ;;  %v3743_v2 = vld [vmem:[%s5483_s17 + $0x20] sm:$0xff]   ;;  %3431 = vmatprep.subr.bf16.mxu0 %v3744_v63  ;;  %v1948_v4 = vld [vmem:[#allocation3 + $0x6a] sm:$0xff]  ;;  %v5049_v40 = vpack.c.bf16 %v1857_v36, %v1856_v53  ;;  %v3752_v44 = vld [vmem:[%s5483_s17 + $0xd8] sm:$0xff]  }
 0x286   : > { %v1947_v39 = vld [vmem:[#allocation3 + $0x62] sm:$0xff]  ;;  %v3753_v9 = vld [vmem:[%s5483_s17 + $0x98] sm:$0xff]   ;;  %v3751_v32 = vld [vmem:[%s5483_s17 + $0x30] sm:$0xff]  }
 0x287   : > { %2118 = vrot.lane.b32.xlu0 %v4948_v54, %s3985_s3  ;;  %3432 = vmatpush3.bf16.msra.mxu0 %v3745_v57  ;;  %v3747_v56 = vld [vmem:[%s5483_s17 + $0x28] sm:$0xff]   ;;  %v1907_v45 = vld [vmem:[#allocation3 + $0xc0] sm:$0xff]  ;;  %v5067_v59 = vpack.c.bf16 %v1948_v4, %v1947_v39  ;;  %v1859_v34 = vld [vmem:[#allocation3 + $0xb1] sm:$0xff] }
 0x288   : > { %2094 = vrot.lane.b32.xlu1 %v4962_v3, %s3985_s3  ;;  %3370 = vmatpush3.bf16.msra.mxu1 %v3737_v41  ;;  %v1908_v0 = vld [vmem:[#allocation3 + $0xc8] sm:$0xff]  ;;  %v3754_v62 = vld [vmem:[%s5483_s17 + $0x78] sm:$0xff]   ;;  %v3756_v42 = vld [vmem:[%s5483_s17 + $0xe0] sm:$0xff]  }
 0x289   : > { %3371 = vmatprep.subr.bf16.mxu1 %v3738_v49  ;;  %3433 = vmatprep.subr.bf16.mxu0 %v3748_v12  ;;  %v1858_v1 = vld [vmem:[#allocation3 + $0xa9] sm:$0xff]  ;;  %v5080_v41 = vpack.c.bf16 %v1908_v0, %v1907_v45  ;;  %v1949_v49 = vld [vmem:[#allocation3 + $0x7a] sm:$0xff]  ;;  %v1951_v43 = vld [vmem:[#allocation3 + $0x92] sm:$0xff] }
 0x28a   : > { %v3757_v51 = vld [vmem:[%s5483_s17 + $0xa0] sm:$0xff]   ;;  %v5087_v52 = vpack.c.bf16 %v1859_v34, %v1858_v1  ;;  %v3755_v60 = vld [vmem:[%s5483_s17 + $0x38] sm:$0xff]   ;;  %v3760_v63 = vld [vmem:[%s5483_s17 + $0xa8] sm:$0xff]  }
 0x28b   : > { %2078 = vrot.lane.b32.xlu0 %v4969_v37, %s3985_s3  ;;  %3434 = vmatpush3.bf16.msra.mxu0 %v3749_v33  ;;  %v1950_v61 = vld [vmem:[#allocation3 + $0x82] sm:$0xff]  ;;  %v1952_v8 = vld [vmem:[#allocation3 + $0x9a] sm:$0xff]  ;;  %v3761_v36 = vld [vmem:[%s5483_s17 + $0xf0] sm:$0xff]  }
 0x28c   : > { %2054 = vrot.lane.b32.xlu1 %v4976_v14, %s3985_s3  ;;  %3372 = vmatpush3.bf16.msra.mxu1 %v3739_v35  ;;  %v3758_v35 = vld [vmem:[%s5483_s17 + $0x100] sm:$0xff]   ;;  %v5105_v53 = vpack.c.bf16 %v1950_v61, %v1949_v49  ;;  %v3762_v57 = vld [vmem:[%s5483_s17 + $0xb0] sm:$0xff]   ;;  %v3763_v12 = vld [vmem:[%s5483_s17 + $0xf8] sm:$0xff]   ;;  %v5120_v4 = vpack.c.bf16 %v1952_v8, %v1951_v43 }
 0x28d   : > { %3373 = vmatprep.subr.bf16.mxu1 %v3742_v19  ;;  %3435 = vmatprep.subr.bf16.mxu0 %v3752_v44  ;;  %v3759_v19 = vld [vmem:[%s5483_s17 + $0xe8] sm:$0xff]   ;;  %v1954_v33 = vld [vmem:[#allocation3 + $0xb2] sm:$0xff] }
 0x28e   : > { %v1953_v39 = vld [vmem:[#allocation3 + $0xaa] sm:$0xff]  ;;  %v2004_v0 = vld [vmem:[#allocation3 + $0xd9] sm:$0xff]  ;;  %v2005_v44 = vld [vmem:[#allocation3 + $0xe1] sm:$0xff] }
 0x28f   : > { %2120 = vrot.lane.b32.xlu0 %v4956_v18, %s3985_s3  ;;  %3436 = vmatpush3.bf16.msra.mxu0 %v3753_v9  ;;  %v5131_v45 = vpack.c.bf16 %v1954_v33, %v1953_v39  ;;  %v1955_v9 = vld [vmem:[#allocation3 + $0xc2] sm:$0xff]  ;;  %v1956_v1 = vld [vmem:[#allocation3 + $0xca] sm:$0xff]  ;;  %v2013_v34 = vpack.c.bf16 %v2005_v44, %v2004_v0 }
 0x290   : > { %2096 = vrot.lane.b32.xlu1 %v4991_v46, %s3985_s3  ;;  %3374 = vmatpush3.bf16.msra.mxu1 %v3743_v2  ;;  %v2002_v2 = vld [vmem:[#allocation3 + $0xc1] sm:$0xff]  ;;  %v3766_v39 = vld [vmem:[%s5483_s17 + $0x110] sm:$0xff]  }
 0x291   : > { %3375 = vmatprep.subr.bf16.mxu1 %v3746_v55  ;;  %3437 = vmatprep.subr.bf16.mxu0 %v3756_v42  ;;  %v2003_v55 = vld [vmem:[#allocation3 + $0xc9] sm:$0xff] }
 0x292   : > { %v1869_v42 = vld [vmem:[#allocation3 + $0xa] sm:$0xff] }
 0x293   : > { %2080 = vrot.lane.b32.xlu0 %v5004_v6, %s3985_s3  ;;  %3438 = vmatpush3.bf16.msra.mxu0 %v3757_v51  ;;  %v1820_v51 = vld [vmem:[#allocation3] sm:$0xff]  ;;  %v1821_v61 = vld [vmem:[#allocation3 + $0x8] sm:$0xff] }
 0x294   : > { %2056 = vrot.lane.b32.xlu1 %v5011_v48, %s3985_s3  ;;  %3376 = vmatpush3.bf16.msra.mxu1 %v3747_v56  ;;  %v3764_v56 = vld [vmem:[%s5483_s17 + $0xb8] sm:$0xff]   ;;  %v1836_v8 = vpack.c.bf16 %v1821_v61, %v1820_v51 }
 0x295   : > { %3377 = vmatprep.subr.bf16.mxu1 %v3750_v47  ;;  %3439 = vmatprep.subr.bf16.mxu0 %v3759_v19  ;;  %v5127_v47 = vpack.c.bf16 %v2003_v55, %v2002_v2 }
 0x297   : > { %2122 = vrot.lane.b32.xlu0 %v4976_v14, %s3985_s3  ;;  %3440 = vmatpush3.bf16.msra.mxu0 %v3760_v63 }
 0x298   : > { %2098 = vrot.lane.b32.xlu1 %v5029_v5, %s3985_s3  ;;  %3378 = vmatpush3.bf16.msra.mxu1 %v3751_v32  ;;  %v5137_v32 = vpack.c.bf16 %v1956_v1, %v1955_v9 }
 0x299   : > { %3379 = vmatprep.subr.bf16.mxu1 %v3754_v62  ;;  %3441 = vmatprep.subr.bf16.mxu0 %v3761_v36  ;;  %v1868_v62 = vld [vmem:[#allocation3 + $0x2] sm:$0xff] }
 0x29a   : > { %v1884_v49 = vpack.c.bf16 %v1869_v42, %v1868_v62 }
 0x29b   : > { %2082 = vrot.lane.b32.xlu0 %v5042_v10, %s3985_s3  ;;  %3442 = vmatpush3.bf16.msra.mxu0 %v3762_v57  ;;  %v3765_v57 = vld [vmem:[%s5483_s17 + $0x108] sm:$0xff]  }
 0x29c   : > { %2058 = vrot.lane.b32.xlu1 %v5049_v40, %s3985_s3  ;;  %3380 = vmatpush3.bf16.msra.mxu1 %v3755_v60 }
 0x29d   : > { %3533 = vmatprep.subr.bf16.mxu1 %v3758_v35  ;;  %3443 = vmatprep.subr.bf16.mxu0 %v3763_v12 }
 0x29f   : > { %2124 = vrot.lane.b32.xlu0 %v5011_v48, %s3985_s3  ;;  %3444 = vmatpush3.bf16.msra.mxu0 %v3764_v56 }
 0x2a0   : > { %2100 = vrot.lane.b32.xlu1 %v5067_v59, %s3985_s3 }
 0x2a3   : > { %2084 = vrot.lane.b32.xlu0 %v5080_v41, %s3985_s3 }
 0x2a4   : > { %2060 = vrot.lane.b32.xlu1 %v5087_v52, %s3985_s3 }
 0x2a7   : > { %2126 = vrot.lane.b32.xlu0 %v5049_v40, %s3985_s3 }
 0x2a8   : > { %2102 = vrot.lane.b32.xlu1 %v5105_v53, %s3985_s3 }
 0x2ab   : > { %2128 = vrot.lane.b32.xlu0 %v5087_v52, %s3985_s3 }
 0x2ac   : > { %2104 = vrot.lane.b32.xlu1 %v5120_v4, %s3985_s3 }
 0x2af   : > { %2130 = vrot.lane.b32.xlu0 %v5127_v47, %s3985_s3 }
 0x2b0   : > { %2106 = vrot.lane.b32.xlu1 %v5131_v45, %s3985_s3 }
 0x2b3   : > { %2132 = vrot.lane.b32.xlu0 %v2013_v34, %s3985_s3 }
 0x2b4   : > { %2108 = vrot.lane.b32.xlu1 %v5137_v32, %s3985_s3  ;;  %s5486_s3 = sld [smem:[#allocation26_spill]] }
 0x2ba   : > { %s5331_s26 = scalar_lea.hbm %s5486_s3, %s3187_s10 }
 0x2e9   : > { %v2071_v60 = vpop.permute.xlu0 %2070 }
 0x2ea   : > { %v2073_v19 = vpop.permute.xlu1 %2072  ;;  %v2168_v43 = vsel %vm492_vm1, %v1884_v49, %v2071_v60 }
 0x2eb   : > { %2613 = vmatprep.mubr.bf16.mxu1 %v2168_v43  ;;  %v2172_v63 = vsel %vm492_vm1, %v4962_v3, %v2073_v19 }
 0x2ed   : > { %v2047_v36 = vpop.permute.xlu0 %2046 }
 0x2ee   : > { %v2136_v2 = vsel %vm492_vm1, %v1836_v8, %v2047_v36  ;;  %v2049_v55 = vpop.permute.xlu1 %2048 }
 0x2ef   : > { %2614 = vmatmul.mubr.bf16.vlgmr.msra.gmra.mrb[40].mxu1 %v2136_v2  ;;  %v2140_v3 = vsel %vm492_vm1, %v4933_v11, %v2049_v55 }
 0x2f0   : > { %3534 = vmatpush3.bf16.msra.mxu1 %v3758_v35  ;;  %2621 = vmatprep.mubr.bf16.mxu1 %v2172_v63  ;;  %v3767_v35 = vld [vmem:[%s5483_s17 + $0x118] sm:$0xff]  }
 0x2f1   : > { %v2075_v12 = vpop.permute.xlu0 %2074  ;;  %3535 = vmatprep.subr.bf16.mxu1 %v3765_v57 }
 0x2f2   : > { %v2051_v33 = vpop.permute.xlu1 %2050  ;;  %v2176_v56 = vsel %vm492_vm1, %v4991_v46, %v2075_v12 }
 0x2f3   : > { %v2144_v62 = vsel %vm492_vm1, %v4935_v7, %v2051_v33 }
 0x2f4   : > { %3536 = vmatpush3.bf16.msra.mxu1 %v3765_v57 }
 0x2f5   : > { %v2077_v0 = vpop.permute.xlu0 %2076  ;;  %3537 = vmatprep.subr.bf16.mxu1 %v3766_v39 }
 0x2f6   : > { %v2053_v44 = vpop.permute.xlu1 %2052  ;;  %v2180_v42 = vsel %vm492_vm1, %v5029_v5, %v2077_v0 }
 0x2f7   : > { %2622 = vmatmul.mubr.bf16.gmra.mrb[44].mxu1 %v2140_v3 }
 0x2f8   : > { %2629 = vmatprep.mubr.bf16.mxu1 %v2176_v56  ;;  %3538 = vmatpush3.bf16.msra.mxu1 %v3766_v39 }
 0x2f9   : > { %v2119_v9 = vpop.permute.xlu0 %2118  ;;  %3539 = vmatprep.subr.bf16.mxu1 %v3767_v35 }
 0x2fa   : > { %v2095_v1 = vpop.permute.xlu1 %2094  ;;  %v2232_v11 = vsel %vm492_vm1, %v4935_v7, %v2119_v9  ;;  %v2148_v7 = vsel %vm492_vm1, %v4944_v58, %v2053_v44 }
 0x2fb   : > { %v2200_v34 = vsel %vm492_vm1, %v4941_v50, %v2095_v1  ;;  %2710 = vmatprep.mubr.bf16.mxu0 %v2232_v11 }
 0x2fc   : > { %2711 = vmatmul.mubr.bf16.vlgmr.msra.gmra.mrb[60].mxu0 %v2200_v34  ;;  %3540 = vmatpush3.bf16.msra.mxu1 %v3767_v35 }
 0x2fd   : > { %v2079_v49 = vpop.permute.xlu0 %2078 }
 0x2fe   : > { %v2055_v51 = vpop.permute.xlu1 %2054  ;;  %v2184_v43 = vsel %vm492_vm1, %v5067_v59, %v2079_v49 }
 0x2ff   : > { %2630 = vmatmul.mubr.bf16.gmra.mrb[48].mxu1 %v2144_v62 }
 0x300   : > { %2637 = vmatprep.mubr.bf16.mxu1 %v2180_v42 }
 0x301   : > { %v2121_v61 = vpop.permute.xlu0 %2120 }
 0x302   : > { %v2236_v60 = vsel %vm492_vm1, %v4944_v58, %v2121_v61  ;;  %v2097_v19 = vpop.permute.xlu1 %2096  ;;  %v2152_v58 = vsel %vm492_vm1, %v4952_v13, %v2055_v51 }
 0x303   : > { %v2204_v50 = vsel %vm492_vm1, %v4948_v54, %v2097_v19  ;;  %2718 = vmatprep.mubr.bf16.mxu0 %v2236_v60  ;;  %v1981_v60 = vld [vmem:[#allocation3 + $0xe0] sm:$0xff] }
 0x304   : > { %2719 = vmatmul.mubr.bf16.gmra.mrb[64].mxu0 %v2204_v50 }
 0x305   : > { %v2081_v8 = vpop.permute.xlu0 %2080 }
 0x306   : > { %v2057_v63 = vpop.permute.xlu1 %2056  ;;  %v2188_v55 = vsel %vm492_vm1, %v5105_v53, %v2081_v8 }
 0x307   : > { %2638 = vmatmul.mubr.bf16.gmra.mrb[52].mxu1 %v2148_v7 }
 0x308   : > { %2645 = vmatprep.mubr.bf16.mxu1 %v2184_v43 }
 0x309   : > { %v2123_v36 = vpop.permute.xlu0 %2122 }
 0x30a   : > { %v2240_v57 = vsel %vm492_vm1, %v4952_v13, %v2123_v36  ;;  %v2099_v2 = vpop.permute.xlu1 %2098  ;;  %v2156_v13 = vsel %vm492_vm1, %v4969_v37, %v2057_v63 }
 0x30b   : > { %v2208_v54 = vsel %vm492_vm1, %v4956_v18, %v2099_v2  ;;  %2726 = vmatprep.mubr.bf16.mxu0 %v2240_v57 }
 0x30c   : > { %2727 = vmatmul.mubr.bf16.gmra.mrb[68].mxu0 %v2208_v54 }
 0x30d   : > { %v2083_v12 = vpop.permute.xlu0 %2082 }
 0x30e   : > { %v2059_v39 = vpop.permute.xlu1 %2058  ;;  %v2192_v0 = vsel %vm492_vm1, %v5120_v4, %v2083_v12 }
 0x30f   : > { %2646 = vmatmul.mubr.bf16.gmra.mrb[56].mxu1 %v2152_v58 }
 0x310   : > { %2653 = vmatprep.mubr.bf16.mxu1 %v2188_v55 }
 0x311   : > { %v2125_v33 = vpop.permute.xlu0 %2124 }
 0x312   : > { %v2244_v3 = vsel %vm492_vm1, %v4969_v37, %v2125_v33  ;;  %v2101_v56 = vpop.permute.xlu1 %2100  ;;  %v2160_v37 = vsel %vm492_vm1, %v5004_v6, %v2059_v39 }
 0x313   : > { %v2212_v18 = vsel %vm492_vm1, %v4976_v14, %v2101_v56  ;;  %2734 = vmatprep.mubr.bf16.mxu0 %v2244_v3 }
 0x314   : > { %2735 = vmatmul.mubr.bf16.gmra.mrb[72].mxu0 %v2212_v18 }
 0x315   : > { %v2085_v35 = vpop.permute.xlu0 %2084 }
 0x316   : > { %v2061_v44 = vpop.permute.xlu1 %2060  ;;  %v2196_v34 = vsel %vm492_vm1, %v5131_v45, %v2085_v35 }
 0x317   : > { %2654 = vmatmul.mubr.bf16.gmra.mrb[60].mxu1 %v2156_v13  ;;  %v2164_v19 = vsel %vm492_vm1, %v5042_v10, %v2061_v44 }
 0x318   : > { %2661 = vmatprep.mubr.bf16.mxu1 %v2192_v0 }
 0x319   : > { %v2127_v9 = vpop.permute.xlu0 %2126 }
 0x31a   : > { %v2248_v1 = vsel %vm492_vm1, %v5004_v6, %v2127_v9  ;;  %v2103_v11 = vpop.permute.xlu1 %2102  ;;  %v1980_v6 = vld [vmem:[#allocation3 + $0xd8] sm:$0xff] }
 0x31b   : > { %v2216_v14 = vsel %vm492_vm1, %v5011_v48, %v2103_v11  ;;  %2742 = vmatprep.mubr.bf16.mxu0 %v2248_v1  ;;  %v1989_v7 = vpack.c.bf16 %v1981_v60, %v1980_v6 }
 0x31c   : > { %2743 = vmatmul.mubr.bf16.gmra.mrb[76].mxu0 %v2216_v14 }
 0x31d   : > { %v2129_v62 = vpop.permute.xlu0 %2128 }
 0x31e   : > { %v2252_v42 = vsel %vm492_vm1, %v5042_v10, %v2129_v62  ;;  %v2105_v49 = vpop.permute.xlu1 %2104 }
 0x31f   : > { %2662 = vmatmul.mubr.bf16.gmra.mrb[64].mxu1 %v2160_v37  ;;  %2750 = vmatprep.mubr.bf16.mxu0 %v2252_v42  ;;  %v2220_v51 = vsel %vm492_vm1, %v5049_v40, %v2105_v49 }
 0x320   : > { %2669 = vmatprep.mubr.bf16.mxu1 %v2196_v34 }
 0x321   : > { %v2131_v48 = vpop.permute.xlu0 %2130 }
 0x322   : > { %v2256_v61 = vsel %vm492_vm1, %v5080_v41, %v2131_v48  ;;  %v2107_v50 = vpop.permute.xlu1 %2106 }
 0x323   : > { %v2224_v40 = vsel %vm492_vm1, %v5087_v52, %v2107_v50 }
 0x324   : > { %2751 = vmatmul.mubr.bf16.gmra.mrb[80].mxu0 %v2220_v51 }
 0x325   : > { %2758 = vmatprep.mubr.bf16.mxu0 %v2256_v61  ;;  %v2133_v43 = vpop.permute.xlu0 %2132 }
 0x326   : > { %v2260_v8 = vsel %vm492_vm1, %v1989_v7, %v2133_v43  ;;  %v2109_v41 = vpop.permute.xlu1 %2108 }
 0x327   : > { %2670 = vmatmul.mubr.bf16.gmra.mrb[68].mxu1 %v2164_v19  ;;  %v2228_v10 = vsel %vm492_vm1, %v5127_v47, %v2109_v41 }
 0x328   : > { %3541 = vmatprep.mubr.msk.bf16.mxu1 %vm492_vm1, %v4991_v46  ;;  %v2028_v46 = vld [vmem:[#allocation3 + $0xda] sm:$0xff] }
 0x32c   : > { %2759 = vmatmul.mubr.bf16.gmra.mrb[84].mxu0 %v2224_v40 }
 0x32d   : > { %2766 = vmatprep.mubr.bf16.mxu0 %v2260_v8 }
 0x32f   : > { %3542 = vmatmul.mubr.msk.bf16.vlgmr.msra.gmra.mrb[72].mxu1 %vm492_vm1, %v5029_v5  ;;  %v2029_v5 = vld [vmem:[#allocation3 + $0xe2] sm:$0xff] }
 0x330   : > { %3545 = vmatprep.mubr.msk.bf16.mxu1 %vm492_vm1, %v5067_v59  ;;  %v2037_v52 = vpack.c.bf16 %v2029_v5, %v2028_v46 }
 0x334   : > { %2767 = vmatmul.mubr.bf16.gmra.mrb[88].mxu0 %v2228_v10 }
 0x337   : > { %3546 = vmatmul.mubr.msk.bf16.gmra.mrb[76].mxu1 %vm492_vm1, %v5105_v53 }
 0x338   : > { %3549 = vmatprep.mubr.msk.bf16.mxu1 %vm492_vm1, %v5120_v4 }
 0x33f   : > { %3550 = vmatmul.mubr.msk.bf16.gmra.mrb[80].mxu1 %vm492_vm1, %v5131_v45  ;;  %v5230_v45 = vld [vmem:[%s5484_s7] ss:$0 sm:$0xff]  ;;  %s3834_s7 = scalar_lea.vmem %s3833_s5, 4096 }
 0x340   : > { %3553 = vmatprep.mubr.msk.bf16.mxu1 %vm492_vm1, %v5137_v32  ;;  %p3836_p12 = scmp.lt.s32.totalorder %s3834_s7, %s3828_s27 }
 0x342   : > { %p3837_p13 = por %p3836_p12, %p3835_p7 }
 0x344   : > { %p3838_p1 = pnand %p3837_p13, %p3831_p6 }
 0x347   : > { %3554 = vmatmul.mubr.msk.bf16.gmra.mrb[84].mxu1 %vm492_vm1, %v2037_v52 }
 0x3c2   : > { %v3381_v59 = vpop.f32.mrb[40].mxu1 }
 0x3c3   : > { %v3382_v47 = vpop.f32.mrb[41].mxu1 }
 0x3c4   : > { %v3383_v63 = vadd.f32 %v3382_v47, %v3381_v59  ;;  %v3384_v36 = vpop.f32.mrb[42].mxu1 }
 0x3c5   : > { %v3385_v57 = vpop.f32.mrb[43].mxu1 }
 0x3c6   : > { %v3386_v53 = vadd.f32 %v3385_v57, %v3384_v36  ;;  %v2616_v33 = vadd.f32 %v3383_v63, %v5230_v45 }
 0x3c8   : > { %v2619_v0 = vadd.f32 %v3386_v53, %v5230_v45 }
 0x3ca   : > { %v3387_v2 = vpop.f32.mrb[44].mxu1 }
 0x3cb   : > { %v3388_v54 = vpop.f32.mrb[45].mxu1 }
 0x3cc   : > { %v3389_v4 = vadd.f32 %v3388_v54, %v3387_v2  ;;  %v3390_v58 = vpop.f32.mrb[46].mxu1 }
 0x3cd   : > { %v3391_v55 = vpop.f32.mrb[47].mxu1 }
 0x3ce   : > { %v3392_v32 = vadd.f32 %v3391_v55, %v3390_v58  ;;  %v2624_v49 = vadd.f32 %v3389_v4, %v5230_v45 }
 0x3cf   : > { %v3445_v12 = vpop.f32.mrb[60].mxu0 }
 0x3d0   : > { %v3446_v39 = vpop.f32.mrb[61].mxu0  ;;  %v2627_v60 = vadd.f32 %v3392_v32, %v5230_v45 }
 0x3d1   : > { %v3447_v3 = vadd.f32 %v3446_v39, %v3445_v12  ;;  %v3448_v56 = vpop.f32.mrb[62].mxu0 }
 0x3d2   : > { %v3393_v18 = vpop.f32.mrb[48].mxu1  ;;  %v3449_v13 = vpop.f32.mrb[63].mxu0 }
 0x3d3   : > { %v3450_v35 = vadd.f32 %v3449_v13, %v3448_v56  ;;  %v3394_v44 = vpop.f32.mrb[49].mxu1  ;;  %v5234_v9 = vadd.f32 %v3447_v3, %v2616_v33 }
 0x3d4   : > { %v3395_v1 = vadd.f32 %v3394_v44, %v3393_v18  ;;  %v3396_v11 = vpop.f32.mrb[50].mxu1 }
 0x3d5   : > { %v3397_v14 = vpop.f32.mrb[51].mxu1  ;;  %v5236_v37 = vadd.f32 %v3450_v35, %v2619_v0 }
 0x3d6   : > { %v3398_v34 = vadd.f32 %v3397_v14, %v3396_v11  ;;  %v2632_v52 = vadd.f32 %v3395_v1, %v5230_v45 }
 0x3d7   : > { %v3451_v62 = vpop.f32.mrb[64].mxu0 }
 0x3d8   : > { %v3452_v42 = vpop.f32.mrb[65].mxu0  ;;  %v2635_v57 = vadd.f32 %v3398_v34, %v5230_v45 }
 0x3d9   : > { %v3453_v51 = vadd.f32 %v3452_v42, %v3451_v62  ;;  %v3454_v48 = vpop.f32.mrb[66].mxu0 }
 0x3da   : > { %v3399_v61 = vpop.f32.mrb[52].mxu1  ;;  %v3455_v6 = vpop.f32.mrb[67].mxu0 }
 0x3db   : > { %v3456_v19 = vadd.f32 %v3455_v6, %v3454_v48  ;;  %v3400_v50 = vpop.f32.mrb[53].mxu1  ;;  %v5240_v7 = vadd.f32 %v3453_v51, %v2624_v49 }
 0x3dc   : > { %v3401_v43 = vadd.f32 %v3400_v50, %v3399_v61  ;;  %v3402_v40 = vpop.f32.mrb[54].mxu1 }
 0x3dd   : > { %v3403_v8 = vpop.f32.mrb[55].mxu1  ;;  %v5242_v41 = vadd.f32 %v3456_v19, %v2627_v60 }
 0x3de   : > { %v3404_v10 = vadd.f32 %v3403_v8, %v3402_v40  ;;  %v2640_v3 = vadd.f32 %v3401_v43, %v5230_v45 }
 0x3df   : > { %v3457_v46 = vpop.f32.mrb[68].mxu0 }
 0x3e0   : > { %v3458_v5 = vpop.f32.mrb[69].mxu0  ;;  %v2643_v35 = vadd.f32 %v3404_v10, %v5230_v45 }
 0x3e1   : > { %v3459_v59 = vadd.f32 %v3458_v5, %v3457_v46  ;;  %v3460_v47 = vpop.f32.mrb[70].mxu0 }
 0x3e2   : > { %v3405_v63 = vpop.f32.mrb[56].mxu1  ;;  %v3461_v36 = vpop.f32.mrb[71].mxu0 }
 0x3e3   : > { %v3462_v53 = vadd.f32 %v3461_v36, %v3460_v47  ;;  %v3406_v2 = vpop.f32.mrb[57].mxu1  ;;  %v5246_v54 = vadd.f32 %v3459_v59, %v2632_v52 }
 0x3e4   : > { %v3407_v4 = vadd.f32 %v3406_v2, %v3405_v63  ;;  %v3408_v58 = vpop.f32.mrb[58].mxu1 }
 0x3e5   : > { %v3409_v55 = vpop.f32.mrb[59].mxu1  ;;  %v5248_v32 = vadd.f32 %v3462_v53, %v2635_v57 }
 0x3e6   : > { %v3410_v12 = vadd.f32 %v3409_v55, %v3408_v58  ;;  %v2648_v61 = vadd.f32 %v3407_v4, %v5230_v45 }
 0x3e7   : > { %v3463_v39 = vpop.f32.mrb[72].mxu0 }
 0x3e8   : > { %v3464_v33 = vpop.f32.mrb[73].mxu0  ;;  %v2651_v43 = vadd.f32 %v3410_v12, %v5230_v45 }
 0x3e9   : > { %v3465_v56 = vadd.f32 %v3464_v33, %v3463_v39  ;;  %v3466_v18 = vpop.f32.mrb[74].mxu0 }
 0x3ea   : > { %v3411_v13 = vpop.f32.mrb[60].mxu1  ;;  %v3467_v0 = vpop.f32.mrb[75].mxu0 }
 0x3eb   : > { %v3468_v44 = vadd.f32 %v3467_v0, %v3466_v18  ;;  %v3412_v1 = vpop.f32.mrb[61].mxu1  ;;  %v5252_v11 = vadd.f32 %v3465_v56, %v2640_v3 }
 0x3ec   : > { %v3413_v14 = vadd.f32 %v3412_v1, %v3411_v13  ;;  %v3414_v34 = vpop.f32.mrb[62].mxu1 }
 0x3ed   : > { %v3415_v62 = vpop.f32.mrb[63].mxu1  ;;  %v5254_v42 = vadd.f32 %v3468_v44, %v2643_v35 }
 0x3ee   : > { %v3416_v49 = vadd.f32 %v3415_v62, %v3414_v34  ;;  %v2656_v57 = vadd.f32 %v3413_v14, %v5230_v45 }
 0x3ef   : > { %v3469_v51 = vpop.f32.mrb[76].mxu0 }
 0x3f0   : > { %v3470_v48 = vpop.f32.mrb[77].mxu0  ;;  %v2659_v55 = vadd.f32 %v3416_v49, %v5230_v45 }
 0x3f1   : > { %v3471_v6 = vadd.f32 %v3470_v48, %v3469_v51  ;;  %v3472_v60 = vpop.f32.mrb[78].mxu0 }
 0x3f2   : > { %v3417_v19 = vpop.f32.mrb[64].mxu1  ;;  %v3473_v50 = vpop.f32.mrb[79].mxu0 }
 0x3f3   : > { %v3474_v40 = vadd.f32 %v3473_v50, %v3472_v60  ;;  %v3418_v8 = vpop.f32.mrb[65].mxu1  ;;  %v5258_v10 = vadd.f32 %v3471_v6, %v2648_v61 }
 0x3f4   : > { %v3419_v46 = vadd.f32 %v3418_v8, %v3417_v19  ;;  %v3420_v5 = vpop.f32.mrb[66].mxu1 }
 0x3f5   : > { %v3421_v52 = vpop.f32.mrb[67].mxu1  ;;  %v5260_v59 = vadd.f32 %v3474_v40, %v2651_v43 }
 0x3f6   : > { %v3422_v47 = vadd.f32 %v3421_v52, %v3420_v5  ;;  %v2664_v1 = vadd.f32 %v3419_v46, %v5230_v45 }
 0x3f7   : > { %v3475_v63 = vpop.f32.mrb[80].mxu0 }
 0x3f8   : > { %v3476_v36 = vpop.f32.mrb[81].mxu0  ;;  %v2667_v48 = vadd.f32 %v3422_v47, %v5230_v45 }
 0x3f9   : > { %v3477_v53 = vadd.f32 %v3476_v36, %v3475_v63  ;;  %v3478_v2 = vpop.f32.mrb[82].mxu0 }
 0x3fa   : > { %v3423_v4 = vpop.f32.mrb[68].mxu1  ;;  %v3479_v58 = vpop.f32.mrb[83].mxu0 }
 0x3fb   : > { %v3480_v12 = vadd.f32 %v3479_v58, %v3478_v2  ;;  %v3424_v39 = vpop.f32.mrb[69].mxu1  ;;  %v2753_v33 = vadd.f32 %v3477_v53, %v2656_v57 }
 0x3fc   : > { %v3425_v3 = vadd.f32 %v3424_v39, %v3423_v4  ;;  %v3426_v56 = vpop.f32.mrb[70].mxu1 }
 0x3fd   : > { %v3427_v18 = vpop.f32.mrb[71].mxu1  ;;  %v2756_v13 = vadd.f32 %v3480_v12, %v2659_v55 }
 0x3fe   : > { %v3428_v0 = vadd.f32 %v3427_v18, %v3426_v56  ;;  %v2672_v63 = vadd.f32 %v3425_v3, %v5230_v45 }
 0x3ff   : > { %v3481_v35 = vpop.f32.mrb[84].mxu0 }
 0x400   : > { %v3482_v44 = vpop.f32.mrb[85].mxu0 }
 0x401   : > { %v3483_v34 = vadd.f32 %v3482_v44, %v3481_v35  ;;  %v3484_v14 = vpop.f32.mrb[86].mxu0 }
 0x402   : > { %v3485_v62 = vpop.f32.mrb[87].mxu0  ;;  %v3543_v51 = vpop.f32.mrb[72].mxu1 }
 0x403   : > { %v3486_v49 = vadd.f32 %v3485_v62, %v3484_v14  ;;  %v2818_v61 = vadd.f32 %v3543_v51, %v5240_v7  ;;  %v2809_v6 = vpop.f32.mrb[73].mxu1  ;;  %v5267_v60 = vadd.f32 %v3483_v34, %v2664_v1 }
 0x404   : > { %v2810_v19 = vadd.f32 %v2809_v6, %v5234_v9  ;;  %v3544_v50 = vpop.f32.mrb[74].mxu1 }
 0x405   : > { %v2874_v43 = vadd.f32 %v2818_v61, %v4402_v17  ;;  %v2821_v40 = vadd.f32 %v3544_v50, %v5242_v41  ;;  %v2812_v8 = vpop.f32.mrb[75].mxu1  ;;  %v5272_v46 = vadd.f32 %v3486_v49, %v2667_v48 }
 0x406   : > { %v2872_v5 = vadd.f32 %v2810_v19, %v4396_v15  ;;  %v2813_v52 = vadd.f32 %v2812_v8, %v5236_v37 }
 0x407   : > { %2890 = vst.msk [vmem:[%s4925_s22 + $0x10] sm:$0xff] %vm492_vm1, %v2874_v43  ;;  %v2875_v7 = vadd.f32 %v2821_v40, %v4411_v20  ;;  %v3487_v47 = vpop.f32.mrb[88].mxu0  ;;  %v2675_v20 = vadd.f32 %v3428_v0, %v5230_v45 }
 0x408   : > { %2888 = vst.msk [vmem:[%s4925_s22] sm:$0xff] %vm492_vm1, %v2872_v5  ;;  %v2873_v9 = vadd.f32 %v2813_v52, %v4399_v16  ;;  %v3488_v17 = vpop.f32.mrb[89].mxu0 }
 0x409   : > { %2891 = vst.msk [vmem:[%s4925_s22 + $0x18] sm:$0xff] %vm492_vm1, %v2875_v7  ;;  %v3489_v41 = vadd.f32 %v3488_v17, %v3487_v47  ;;  %v3490_v36 = vpop.f32.mrb[90].mxu0 }
 0x40a   : > { %2889 = vst.msk [vmem:[%s4925_s22 + $0x8] sm:$0xff] %vm492_vm1, %v2873_v9  ;;  %v3491_v15 = vpop.f32.mrb[91].mxu0  ;;  %v3547_v37 = vpop.f32.mrb[76].mxu1 }
 0x40b   : > { %v3492_v57 = vadd.f32 %v3491_v15, %v3490_v36  ;;  %v2834_v53 = vadd.f32 %v3547_v37, %v5252_v11  ;;  %v2825_v16 = vpop.f32.mrb[77].mxu1  ;;  %v2769_v2 = vadd.f32 %v3489_v41, %v2672_v63 }
 0x40c   : > { %v2826_v4 = vadd.f32 %v2825_v16, %v5246_v54  ;;  %v3548_v58 = vpop.f32.mrb[78].mxu1 }
 0x40d   : > { %v2878_v55 = vadd.f32 %v2834_v53, %v4428_v23  ;;  %v2837_v12 = vadd.f32 %v3548_v58, %v5254_v42  ;;  %v2828_v39 = vpop.f32.mrb[79].mxu1  ;;  %v2772_v3 = vadd.f32 %v3492_v57, %v2675_v20 }
 0x40e   : > { %v2876_v56 = vadd.f32 %v2826_v4, %v4416_v21  ;;  %v2829_v45 = vadd.f32 %v2828_v39, %v5248_v32 }
 0x40f   : > { %2894 = vst.msk [vmem:[%s4925_s22 + $0x30] sm:$0xff] %vm492_vm1, %v2878_v55  ;;  %v2879_v11 = vadd.f32 %v2837_v12, %v4431_v24 }
 0x410   : > { %2892 = vst.msk [vmem:[%s4925_s22 + $0x20] sm:$0xff] %vm492_vm1, %v2876_v56  ;;  %v2877_v54 = vadd.f32 %v2829_v45, %v4419_v22 }
 0x411   : > { %2895 = vst.msk [vmem:[%s4925_s22 + $0x38] sm:$0xff] %vm492_vm1, %v2879_v11 }
 0x412   : > { %2893 = vst.msk [vmem:[%s4925_s22 + $0x28] sm:$0xff] %vm492_vm1, %v2877_v54  ;;  %v3551_v23 = vpop.f32.mrb[80].mxu1 }
 0x413   : > { %v2850_v21 = vadd.f32 %v3551_v23, %v2753_v33  ;;  %v2841_v32 = vpop.f32.mrb[81].mxu1 }
 0x414   : > { %v2842_v42 = vadd.f32 %v2841_v32, %v5258_v10  ;;  %v3552_v18 = vpop.f32.mrb[82].mxu1 }
 0x415   : > { %v2882_v24 = vadd.f32 %v2850_v21, %v4448_v27  ;;  %v2853_v0 = vadd.f32 %v3552_v18, %v2756_v13  ;;  %v2844_v35 = vpop.f32.mrb[83].mxu1 }
 0x416   : > { %v2880_v44 = vadd.f32 %v2842_v42, %v4434_v25  ;;  %v2845_v22 = vadd.f32 %v2844_v35, %v5260_v59 }
 0x417   : > { %2898 = vst.msk [vmem:[%s4925_s22 + $0x50] sm:$0xff] %vm492_vm1, %v2882_v24  ;;  %v2883_v33 = vadd.f32 %v2853_v0, %v4451_v28 }
 0x418   : > { %2896 = vst.msk [vmem:[%s4925_s22 + $0x40] sm:$0xff] %vm492_vm1, %v2880_v44  ;;  %v2881_v10 = vadd.f32 %v2845_v22, %v4443_v26 }
 0x419   : > { %2899 = vst.msk [vmem:[%s4925_s22 + $0x58] sm:$0xff] %vm492_vm1, %v2883_v33 }
 0x41a   : > { %2897 = vst.msk [vmem:[%s4925_s22 + $0x48] sm:$0xff] %vm492_vm1, %v2881_v10  ;;  %v3555_v25 = vpop.f32.mrb[84].mxu1 }
 0x41b   : > { %v2866_v27 = vadd.f32 %v3555_v25, %v2769_v2  ;;  %v2857_v59 = vpop.f32.mrb[85].mxu1 }
 0x41c   : > { %v2858_v13 = vadd.f32 %v2857_v59, %v5267_v60  ;;  %v3556_v1 = vpop.f32.mrb[86].mxu1 }
 0x41d   : > { %v2886_v26 = vadd.f32 %v2866_v27, %v4466_v31  ;;  %v2869_v28 = vadd.f32 %v3556_v1, %v2772_v3  ;;  %v2860_v34 = vpop.f32.mrb[87].mxu1 }
 0x41e   : > { %v2884_v14 = vadd.f32 %v2858_v13, %v4460_v29  ;;  %v2861_v62 = vadd.f32 %v2860_v34, %v5272_v46 }
 0x41f   : > { %2902 = vst.msk [vmem:[%s4925_s22 + $0x70] sm:$0xff] %vm492_vm1, %v2886_v26  ;;  %v2887_v51 = vadd.f32 %v2869_v28, %v4477_v38 }
 0x420   : > { %2900 = vst.msk [vmem:[%s4925_s22 + $0x60] sm:$0xff] %vm492_vm1, %v2884_v14  ;;  %v2885_v29 = vadd.f32 %v2861_v62, %v4463_v30 }
 0x421   : > { %2903 = vst.msk [vmem:[%s4925_s22 + $0x78] sm:$0xff] %vm492_vm1, %v2887_v51 }
 0x422   : > { %2901 = vst.msk [vmem:[%s4925_s22 + $0x68] sm:$0xff] %vm492_vm1, %v2885_v29 }
 0x423   : > { %3841 = shalt.err (!%p3838_p1)
}
 0x424   : > { %s3842_s19 = scalar_lea.hbm %s5331_s26, 2048  ;;  %s3846_s1 = scalar_lea.hbm %s5486_s3, 8192 }
 0x425   : > { %p3843_p0 = scmp.ne.s32.totalorder %s5331_s26, %s3842_s19  ;;  %p3847_p2 = scmp.lt.u32.totalorder %s5331_s26, %s5486_s3 }
 0x426   : > { %p3848_p9 = scmp.lt.u32.totalorder %s3846_s1, %s3842_s19  ;;  %p3850_p8 = scmp.lt.u32.totalorder %s3842_s19, %s5331_s26 }
 0x427   : > { %p3844_p5 = pnand %p3843_p0, %p5487_p3 }
 0x428   : > { %p3849_p11 = por %p3848_p9, %p3847_p2 }
 0x429   : > { %p3845_p4 = pneg %p3844_p5 }
 0x42a   : > { %p3851_p10 = por %p3850_p8, %p3849_p11 }
 0x42c   : > { %p3852_p6 = pnand %p3851_p10, %p3845_p4 }
 0x42e   : > { %3855 = shalt.err (!%p3852_p6)
}
 0x42f   : > { %s3989_s10 = smov 128   ;;  %s3990_s15 = smov 8  }
 0x430   : > { %3561 = dma.vmem_to_hbm [thread:$0]  (%p5487_p3), %s5333_s21, 2048, %s5331_s26, %s5344_s0, %s3989_s10, %s3989_s10, %s3990_s15  }
 0x431 PF: > { %s5488_s4 = sld [smem:[#allocation13_spill]]  ;;  %p3575_p7 = scmp.ge.s32.totalorder %s3978_s14, 2 }
 0x432   : > { %p5489_p12 = scmp.ne.s32.totalorder %s5464_s6, 0 }
 0x434   : > { %p3571_p13 = pnand %p3575_p7, %p5489_p12 }
 0x437   : > { %s2936_s27 = sand.u32 1, %s5488_s4  }
 0x438   : > { %s2937_s11 = scalar_lea.sflag [#allocation6], %s2936_s27 }
 0x439   : > { %3921 = dma.done.wait (!%p3571_p13), %s2937_s11, 2048  }
 0x43a   : > { %3923 = vsyncadd (!%p3571_p13), %s2937_s11, 4294965248  ;;  %s26_s14 = sadd.s32 1, %s3978_s14   ;;  %s5491_s16 = sld [smem:[#allocation14_spill]] }
 0x43b   : > { %p5373_p1 = scmp.ge.s32.totalorder %s26_s14, 6   ;;  %s5492_s26 = sld [smem:[#allocation19_spill]] }
 0x43c   : > { %s5493_s21 = sld [smem:[#allocation18_spill]]  ;;  %s5494_s6 = sld [smem:[#allocation16_spill]] }
 0x43d   : > { %s5495_s0 = sld [smem:[#allocation17_spill]]  ;;  %s5496_s24 = smov %s3930_s25 }
 0x43e   : > { %s5498_s27 = smov %s3942_s28  ;;  %s5499_s28 = smov %s3946_s29 }
 0x43f   : > { %s5500_s29 = smov %s4252_s23  ;;  %s5501_s30 = smov %s3954_s8 }
 0x440   : > { %s5497_s25 = smov %s5491_s16  ;;  %s5502_s8 = smov %s3958_s9 }
 0x441   : > { %s5504_s10 = smov %s3970_s12  ;;  %s5505_s11 = smov %s3974_s13 }
 0x442   : > { %s5503_s9 = smov %s5493_s21  ;;  %s5506_s12 = smov %s5494_s6 }
 0x443   : > { %s5507_s13 = smov %s5495_s0  ;;  %25 = sbr.rel (!%p5373_p1) target bundleno = 20 (0x14), region = 123 }
 0x44a   :  { %2942 = vsyncpa [#allocation5], 1 }
 0x44b   :  { %2944 = vsyncpa [#allocation5 + $0x1], 1 }
 0x44c   :  { %2945 = vsyncpa [#allocation8], 1 }
 0x44d   :  { %2947 = vsyncpa [#allocation8 + $0x1], 1 }
 0x44e   :  { %2948 = vsyncpa [#allocation6], 1 }
 0x44f   :  { %2950 = vsyncpa [#allocation6 + $0x1], 1 }

</bundles_post_ra>
